<compile_context>
chip_gen: v6e
topology: v6e:2x2x1
jax: 0.10.0
libtpu: 0.0.40
codegen_flags: <defaults>
</compile_context>

<pallas_src>
import functools
from dataclasses import dataclass

import jax
import jax.numpy as jnp
from jax import lax
from jax.experimental import pallas as pl
from jax.experimental.pallas import tpu as pltpu


# ----------------------------------------------------------------------------
# Config (scaled-down CLIPVisionConfig)
# ----------------------------------------------------------------------------
@dataclass(frozen=True)
class Config:
    image_size: int = 16
    patch_size: int = 8
    channels: int = 3
    hidden: int = 64          # CLIP: 768
    intermediate: int = 128   # CLIP: 3072
    heads: int = 4            # CLIP: 12
    layers: int = 2           # CLIP: 12
    projection_dim: int = 32  # CLIP: 512
    eps: float = 1e-5


# ----------------------------------------------------------------------------
# Fused kernel: grid step l == encoder layer l (embed on first, head on last)
# ----------------------------------------------------------------------------
def _clip_layer_kernel(
    # embedding (resident)
    patches_ref, w_embed_ref, pre_g_ref, pre_b_ref,
    # per-layer streamed params
    ln1_g_ref, ln1_b_ref, wqkv_ref, bqkv_ref, wo_ref, bo_ref,
    ln2_g_ref, ln2_b_ref, w1_ref, b1_ref, w2_ref, b2_ref,
    # head (resident)
    post_g_ref, post_b_ref, vproj_ref,
    # output
    out_ref,
    # scratch: resident activations
    h_scr,
    *, B, S, H, hd, L, eps,
):
    D = H * hd
    BS = B * S
    l = pl.program_id(0)

    def _ln(xv, g, b):
        xf = xv.astype(jnp.float32)
        mu = jnp.mean(xf, axis=-1, keepdims=True)
        var = jnp.mean(jnp.square(xf - mu), axis=-1, keepdims=True)
        return (xf - mu) * lax.rsqrt(var + eps) * g + b

    # ---- embedding (first grid step only); kept resident in VMEM scratch ----
    @pl.when(l == 0)
    def _embed():
        # patch-embed matmul with the positional table folded in via a one-hot
        # block appended to the patch rows (pos/class embeddings ship once).
        h0 = jnp.dot(patches_ref[...], w_embed_ref[...],
                     preferred_element_type=jnp.float32)          # [B*S, D]
        h_scr[...] = _ln(h0, pre_g_ref[...], pre_b_ref[...])      # pre_layrnorm

    h = h_scr[...]                                                 # [B*S, D] f32

    # block-diagonal "same image" mask so every head processes all images with
    # one fat matmul instead of B skinny ones.
    rows = lax.broadcasted_iota(jnp.int32, (BS, BS), 0)
    cols = lax.broadcasted_iota(jnp.int32, (BS, BS), 1)
    same_img = None
    for b in range(B):
        blk = ((rows >= b * S) & (rows < (b + 1) * S)
               & (cols >= b * S) & (cols < (b + 1) * S))
        same_img = blk if same_img is None else (same_img | blk)

    # ---- encoder layer `l` (this layer's weights streamed by BlockSpec) ----
    res = h
    xl = _ln(h, ln1_g_ref[...], ln1_b_ref[...])
    # fused QKV: one lane-dense [B*S, 3D] bf16 matmul; scale folded into wq/bq.
    qkv = (jnp.dot(xl.astype(jnp.bfloat16), wqkv_ref[...],
                   preferred_element_type=jnp.float32) + bqkv_ref[...])
    q = qkv[:, 0:D]
    k = qkv[:, D:2 * D]
    v = qkv[:, 2 * D:3 * D]

    # attention: per-head score/PV matmuls over all images at once; the head
    # merge + out_proj is an accumulation of o_h @ wo[rows_of_head] -- no
    # scratch scatter, no masked stores, no VMEM reload before out_proj.
    attn = jnp.zeros((BS, D), jnp.float32)
    for hh in range(H):
        c0 = hh * hd
        qh = q[:, c0:c0 + hd].astype(jnp.bfloat16)
        kh = k[:, c0:c0 + hd].astype(jnp.bfloat16)
        vh = v[:, c0:c0 + hd].astype(jnp.bfloat16)
        s = lax.dot_general(qh, kh, (((1,), (1,)), ((), ())),
                            preferred_element_type=jnp.float32)    # [BS, BS]
        s = jnp.where(same_img, s, -1e30)
        s = s - jnp.max(s, axis=-1, keepdims=True)
        p = jnp.exp(s)
        p = jnp.where(same_img, p, 0.0)                            # exact zeros
        p = p * pl.reciprocal(jnp.sum(p, axis=-1, keepdims=True), approx=True)
        o = jnp.dot(p.astype(jnp.bfloat16), vh,
                    preferred_element_type=jnp.float32)            # [BS, hd]
        attn = attn + jnp.dot(o.astype(jnp.bfloat16), wo_ref[c0:c0 + hd, :],
                              preferred_element_type=jnp.float32)  # [BS, D]
    h = res + attn + bo_ref[...]                                   # out_proj + residual

    # MLP (quick_gelu) with fused residual add
    res = h
    xl = _ln(h, ln2_g_ref[...], ln2_b_ref[...])
    xl = (jnp.dot(xl.astype(jnp.bfloat16), w1_ref[...],
                  preferred_element_type=jnp.float32) + b1_ref[...])
    xl = xl * jax.nn.sigmoid(1.702 * xl)                           # quick_gelu
    h = (res + jnp.dot(xl.astype(jnp.bfloat16), w2_ref[...],
                       preferred_element_type=jnp.float32) + b2_ref[...])
    h_scr[...] = h

    # ---- pooled-token head (last grid step only), batched over B ----
    @pl.when(l == L - 1)
    def _head():
        # gather the B CLS rows with one exact one-hot f32 matmul
        ridx = lax.broadcasted_iota(jnp.int32, (B, BS), 0)
        cidx = lax.broadcasted_iota(jnp.int32, (B, BS), 1)
        sel = (cidx == ridx * S).astype(jnp.float32)               # [B, B*S]
        cls = jnp.dot(sel, h, preferred_element_type=jnp.float32)  # [B, D]
        cls = _ln(cls, post_g_ref[...], post_b_ref[...])           # post_layernorm
        y = jnp.dot(cls.astype(jnp.bfloat16), vproj_ref[...],
                    preferred_element_type=jnp.float32)            # [B, 128] (padded)
        inv = lax.rsqrt(jnp.sum(y * y, axis=-1, keepdims=True) + 1e-12)
        out_ref[...] = (y * inv).astype(out_ref.dtype)             # one lane-dense store


# ----------------------------------------------------------------------------
# Parameter init (deterministic, synthetic; f32 masters)
# ----------------------------------------------------------------------------
def init_params(key, cfg: Config):
    D, I, P, C = cfg.hidden, cfg.intermediate, cfg.patch_size, cfg.channels
    num_patches = (cfg.image_size // P) ** 2
    S = num_patches + 1

    n_keys = 8 + cfg.layers * 16
    keys = iter(jax.random.split(key, n_keys))

    def nrm(shape, scale=0.02):
        return (scale * jax.random.normal(next(keys), shape)).astype(jnp.float32)

    params = {
        "patch_embed": nrm((D, C, P, P)),          # conv weight, no bias (CLIP)
        "class_embedding": nrm((D,)),
        "position_embedding": nrm((S, D)),
        "pre_ln_g": jnp.ones((D,), jnp.float32),
        "pre_ln_b": jnp.zeros((D,), jnp.float32),
        "post_ln_g": jnp.ones((D,), jnp.float32),
        "post_ln_b": jnp.zeros((D,), jnp.float32),
        "visual_projection": nrm((D, cfg.projection_dim)),  # stored [in, out]
        "layers": [],
    }
    for _ in range(cfg.layers):
        lp = {
            "ln1_g": jnp.ones((D,), jnp.float32), "ln1_b": jnp.zeros((D,), jnp.float32),
            "wq": nrm((D, D)), "bq": nrm((D,)),
            "wk": nrm((D, D)), "bk": nrm((D,)),
            "wv": nrm((D, D)), "bv": nrm((D,)),
            "wo": nrm((D, D)), "bo": nrm((D,)),
            "ln2_g": jnp.ones((D,), jnp.float32), "ln2_b": jnp.zeros((D,), jnp.float32),
            "w1": nrm((D, I)), "b1": nrm((I,)),
            "w2": nrm((I, D)), "b2": nrm((D,)),
        }
        params["layers"].append(lp)
    return params


# ----------------------------------------------------------------------------
# Forward pass wrapper (only layout prep / weight packing outside the kernel)
# ----------------------------------------------------------------------------
def image_encoder_forward(params, x, cfg: Config):
    """x: [B, C, H, W] NCHW -> [B, projection_dim] L2-normalized embeddings."""
    B, C, Himg, Wimg = x.shape
    P, D, I = cfg.patch_size, cfg.hidden, cfg.intermediate
    H, L = cfg.heads, cfg.layers
    Hp, Wp = Himg // P, Wimg // P
    NP = Hp * Wp
    S = NP + 1
    hd = D // H
    scale = hd ** -0.5
    CPP = C * P * P
    PROJ = cfg.projection_dim
    PROJ_PAD = ((PROJ + 127) // 128) * 128     # lane-dense output width

    # --- layout-only patch extraction; conv(kernel=stride=P) == matmul ---
    patches = (x.reshape(B, C, Hp, P, Wp, P)
                 .transpose(0, 2, 4, 1, 3, 5)           # [B, Hp, Wp, C, P, P]
                 .reshape(B, NP, CPP))
    # zero "patch" row per image for the CLS token (its embedding comes purely
    # from the one-hot/positional part of the augmented matmul below)
    patches_full = jnp.concatenate(
        [jnp.zeros((B, 1, CPP), patches.dtype), patches], axis=1
    ).reshape(B * S, CPP)
    # one-hot position selector: folds the positional-embedding (+class emb)
    # add into the patch-embed matmul; pos table ships once as [S, D].
    pos_onehot = jnp.tile(jnp.eye(S, dtype=patches.dtype), (B, 1))      # [B*S, S]
    patches_aug = jnp.concatenate([patches_full, pos_onehot],
                                  axis=1).astype(jnp.bfloat16)          # [B*S, CPP+S]

    w_patch = params["patch_embed"].reshape(D, CPP).T                   # [CPP, D]
    pos_cls = params["position_embedding"].at[0, :].add(params["class_embedding"])
    w_embed_aug = jnp.concatenate([w_patch, pos_cls],
                                  axis=0).astype(jnp.bfloat16)          # [CPP+S, D]

    # --- stacked per-layer params (bf16 matmul weights, f32 biases / LN) ---
    lps = params["layers"]
    wqkv = jnp.stack(
        [jnp.concatenate([lp["wq"] * scale, lp["wk"], lp["wv"]], axis=1)
         for lp in lps]).astype(jnp.bfloat16)                           # [L, D, 3D]
    bqkv = jnp.stack([jnp.concatenate([lp["bq"] * scale, lp["bk"], lp["bv"]])
                      for lp in lps]).reshape(L, 1, 3 * D)
    wo = jnp.stack([lp["wo"] for lp in lps]).astype(jnp.bfloat16)       # [L, D, D]
    bo = jnp.stack([lp["bo"] for lp in lps]).reshape(L, 1, D)
    ln1_g = jnp.stack([lp["ln1_g"] for lp in lps]).reshape(L, 1, D)
    ln1_b = jnp.stack([lp["ln1_b"] for lp in lps]).reshape(L, 1, D)
    ln2_g = jnp.stack([lp["ln2_g"] for lp in lps]).reshape(L, 1, D)
    ln2_b = jnp.stack([lp["ln2_b"] for lp in lps]).reshape(L, 1, D)
    w1 = jnp.stack([lp["w1"] for lp in lps]).astype(jnp.bfloat16)       # [L, D, I]
    b1 = jnp.stack([lp["b1"] for lp in lps]).reshape(L, 1, I)
    w2 = jnp.stack([lp["w2"] for lp in lps]).astype(jnp.bfloat16)       # [L, I, D]
    b2 = jnp.stack([lp["b2"] for lp in lps]).reshape(L, 1, D)

    # lane-dense projection: zero-padded columns don't change the L2 norm
    vproj_pad = (jnp.zeros((D, PROJ_PAD), jnp.float32)
                 .at[:, :PROJ].set(params["visual_projection"])
                 ).astype(jnp.bfloat16)

    pre_g = params["pre_ln_g"].reshape(1, D)
    pre_b = params["pre_ln_b"].reshape(1, D)
    post_g = params["post_ln_g"].reshape(1, D)
    post_b = params["post_ln_b"].reshape(1, D)

    kernel = functools.partial(_clip_layer_kernel,
                               B=B, S=S, H=H, hd=hd, L=L, eps=cfg.eps)

    def _resident(shape):
        n = len(shape)
        return pl.BlockSpec(tuple(shape), lambda l, n=n: (0,) * n)

    def _per_layer(shape):
        tail = tuple(shape[1:])
        return pl.BlockSpec((None,) + tail, lambda l: (l, 0, 0))

    in_specs = [
        _resident(patches_aug.shape),
        _resident(w_embed_aug.shape),
        _resident(pre_g.shape), _resident(pre_b.shape),
        _per_layer(ln1_g.shape), _per_layer(ln1_b.shape),
        _per_layer(wqkv.shape), _per_layer(bqkv.shape),
        _per_layer(wo.shape), _per_layer(bo.shape),
        _per_layer(ln2_g.shape), _per_layer(ln2_b.shape),
        _per_layer(w1.shape), _per_layer(b1.shape),
        _per_layer(w2.shape), _per_layer(b2.shape),
        _resident(post_g.shape), _resident(post_b.shape),
        _resident(vproj_pad.shape),
    ]

    out = pl.pallas_call(
        kernel,
        out_shape=jax.ShapeDtypeStruct((B, PROJ_PAD), jnp.float32),
        grid=(L,),
        in_specs=in_specs,
        out_specs=pl.BlockSpec((B, PROJ_PAD), lambda l: (0, 0)),
        scratch_shapes=[pltpu.VMEM((B * S, D), jnp.float32)],   # resident activations
        compiler_params=pltpu.CompilerParams(
            dimension_semantics=("arbitrary",),
            vmem_limit_bytes=32 * 1024 * 1024),
    )(patches_aug, w_embed_aug, pre_g, pre_b,
      ln1_g, ln1_b, wqkv, bqkv, wo, bo,
      ln2_g, ln2_b, w1, b1, w2, b2,
      post_g, post_b, vproj_pad)

    return out[:, :PROJ].astype(x.dtype)


# ----------------------------------------------------------------------------
# Main
# ----------------------------------------------------------------------------
if __name__ == "__main__":
    cfg = Config()
    key = jax.random.PRNGKey(0)
    k_params, k_x = jax.random.split(key)

    params = init_params(k_params, cfg)
    x = jax.random.normal(k_x, (2, cfg.channels, cfg.image_size, cfg.image_size),
                          dtype=jnp.float32)

    fwd = jax.jit(functools.partial(image_encoder_forward, cfg=cfg))
    out = fwd(params, x)
    out = jax.block_until_ready(out)

    assert out.shape == (2, cfg.projection_dim), out.shape
    # embeddings must be unit-norm
    norms = jnp.linalg.norm(out, axis=-1)
    assert bool(jnp.all(jnp.abs(norms - 1.0) < 1e-3)), norms

    print("KERNEL_OK")
</pallas_src>

<mosaic_0001>
module attributes {stable_mosaic.version = 11 : i64} {
  func.func @_clip_layer_kernel(%arg0: i32, %arg1: memref<10x197xbf16, #tpu.memory_space<vmem>>, %arg2: memref<197x64xbf16, #tpu.memory_space<vmem>>, %arg3: memref<1x64xf32, #tpu.memory_space<vmem>>, %arg4: memref<1x64xf32, #tpu.memory_space<vmem>>, %arg5: memref<1x1x64xf32, #tpu.memory_space<vmem>>, %arg6: memref<1x1x64xf32, #tpu.memory_space<vmem>>, %arg7: memref<1x64x192xbf16, #tpu.memory_space<vmem>>, %arg8: memref<1x1x192xf32, #tpu.memory_space<vmem>>, %arg9: memref<1x64x64xbf16, #tpu.memory_space<vmem>>, %arg10: memref<1x1x64xf32, #tpu.memory_space<vmem>>, %arg11: memref<1x1x64xf32, #tpu.memory_space<vmem>>, %arg12: memref<1x1x64xf32, #tpu.memory_space<vmem>>, %arg13: memref<1x64x128xbf16, #tpu.memory_space<vmem>>, %arg14: memref<1x1x128xf32, #tpu.memory_space<vmem>>, %arg15: memref<1x128x64xbf16, #tpu.memory_space<vmem>>, %arg16: memref<1x1x64xf32, #tpu.memory_space<vmem>>, %arg17: memref<1x64xf32, #tpu.memory_space<vmem>>, %arg18: memref<1x64xf32, #tpu.memory_space<vmem>>, %arg19: memref<64x128xbf16, #tpu.memory_space<vmem>>, %arg20: memref<2x128xf32, #tpu.memory_space<vmem>>, %arg21: memref<10x64xf32, #tpu.memory_space<vmem>>) attributes {dimension_semantics = [#tpu.dimension_semantics<arbitrary>], iteration_bounds = array<i64: 2>, scalar_prefetch = 0 : i64, scratch_operands = 1 : i64, tpu.core_type = #tpu.core_type<tc>, window_params = [{pipeline_mode = #tpu.pipeline_mode<synchronous>, transform_indices = @transform_0, window_bounds = array<i64: 10, 197>}, {pipeline_mode = #tpu.pipeline_mode<synchronous>, transform_indices = @transform_1, window_bounds = array<i64: 197, 64>}, {pipeline_mode = #tpu.pipeline_mode<synchronous>, transform_indices = @transform_2, window_bounds = array<i64: 1, 64>}, {pipeline_mode = #tpu.pipeline_mode<synchronous>, transform_indices = @transform_3, window_bounds = array<i64: 1, 64>}, {transform_indices = @transform_4, window_bounds = array<i64: 1, 1, 64>}, {transform_indices = @transform_5, window_bounds = array<i64: 1, 1, 64>}, {transform_indices = @transform_6, window_bounds = array<i64: 1, 64, 192>}, {transform_indices = @transform_7, window_bounds = array<i64: 1, 1, 192>}, {transform_indices = @transform_8, window_bounds = array<i64: 1, 64, 64>}, {transform_indices = @transform_9, window_bounds = array<i64: 1, 1, 64>}, {transform_indices = @transform_10, window_bounds = array<i64: 1, 1, 64>}, {transform_indices = @transform_11, window_bounds = array<i64: 1, 1, 64>}, {transform_indices = @transform_12, window_bounds = array<i64: 1, 64, 128>}, {transform_indices = @transform_13, window_bounds = array<i64: 1, 1, 128>}, {transform_indices = @transform_14, window_bounds = array<i64: 1, 128, 64>}, {transform_indices = @transform_15, window_bounds = array<i64: 1, 1, 64>}, {pipeline_mode = #tpu.pipeline_mode<synchronous>, transform_indices = @transform_16, window_bounds = array<i64: 1, 64>}, {pipeline_mode = #tpu.pipeline_mode<synchronous>, transform_indices = @transform_17, window_bounds = array<i64: 1, 64>}, {pipeline_mode = #tpu.pipeline_mode<synchronous>, transform_indices = @transform_18, window_bounds = array<i64: 64, 128>}, {pipeline_mode = #tpu.pipeline_mode<synchronous>, transform_indices = @transform_19, window_bounds = array<i64: 2, 128>}]} {
    %c0_i32 = arith.constant 0 : i32
    %0 = arith.cmpi eq, %arg0, %c0_i32 : i32
    %1 = arith.extui %0 : i1 to i32
    %c0_i32_0 = arith.constant 0 : i32
    %2 = arith.cmpi ne, %1, %c0_i32_0 : i32
    scf.if %2 {
      %c0_96 = arith.constant 0 : index
      %c0_97 = arith.constant 0 : index
      %239 = vector.load %arg1[%c0_96, %c0_97] : memref<10x197xbf16, #tpu.memory_space<vmem>>, vector<10x197xbf16>
      %c0_98 = arith.constant 0 : index
      %c0_99 = arith.constant 0 : index
      %240 = vector.load %arg2[%c0_98, %c0_99] : memref<197x64xbf16, #tpu.memory_space<vmem>>, vector<197x64xbf16>
      %cst_100 = arith.constant dense<0.000000e+00> : vector<10x64xf32>
      %241 = tpu.matmul %239, %240, %cst_100 {dimension_numbers = #tpu.dot_dimension_numbers<[1], [0], [0], [1], [0, 0, 1, 1], [], []>} : vector<10x197xbf16>, vector<197x64xbf16>, vector<10x64xf32> -> vector<10x64xf32>
      %c0_101 = arith.constant 0 : index
      %c0_102 = arith.constant 0 : index
      %242 = vector.load %arg3[%c0_101, %c0_102] : memref<1x64xf32, #tpu.memory_space<vmem>>, vector<1x64xf32>
      %c0_103 = arith.constant 0 : index
      %c0_104 = arith.constant 0 : index
      %243 = vector.load %arg4[%c0_103, %c0_104] : memref<1x64xf32, #tpu.memory_space<vmem>>, vector<1x64xf32>
      %cst_105 = arith.constant dense<0.000000e+00> : vector<10xf32>
      %244 = vector.multi_reduction <add>, %241, %cst_105 [1] : vector<10x64xf32> to vector<10xf32>
      %245 = vector.shape_cast %244 : vector<10xf32> to vector<10x1xf32>
      %cst_106 = arith.constant 6.400000e+01 : f32
      %246 = vector.broadcast %cst_106 : f32 to vector<10x1xf32>
      %247 = arith.divf %245, %246 : vector<10x1xf32>
      %248 = vector.broadcast %247 : vector<10x1xf32> to vector<10x64xf32>
      %249 = arith.subf %241, %248 : vector<10x64xf32>
      %250 = arith.mulf %249, %249 : vector<10x64xf32>
      %cst_107 = arith.constant dense<0.000000e+00> : vector<10xf32>
      %251 = vector.multi_reduction <add>, %250, %cst_107 [1] : vector<10x64xf32> to vector<10xf32>
      %252 = vector.shape_cast %251 : vector<10xf32> to vector<10x1xf32>
      %cst_108 = arith.constant 6.400000e+01 : f32
      %253 = vector.broadcast %cst_108 : f32 to vector<10x1xf32>
      %254 = arith.divf %252, %253 : vector<10x1xf32>
      %255 = vector.broadcast %247 : vector<10x1xf32> to vector<10x64xf32>
      %256 = arith.subf %241, %255 : vector<10x64xf32>
      %cst_109 = arith.constant 9.99999974E-6 : f32
      %257 = vector.broadcast %cst_109 : f32 to vector<10x1xf32>
      %258 = arith.addf %254, %257 : vector<10x1xf32>
      %259 = math.rsqrt %258 : vector<10x1xf32>
      %260 = vector.broadcast %259 : vector<10x1xf32> to vector<10x64xf32>
      %261 = arith.mulf %256, %260 : vector<10x64xf32>
      %262 = vector.broadcast %242 : vector<1x64xf32> to vector<10x64xf32>
      %263 = arith.mulf %261, %262 : vector<10x64xf32>
      %264 = vector.broadcast %243 : vector<1x64xf32> to vector<10x64xf32>
      %265 = arith.addf %263, %264 : vector<10x64xf32>
      %c0_110 = arith.constant 0 : index
      %c0_111 = arith.constant 0 : index
      %266 = vector.load %arg21[%c0_110, %c0_111] : memref<10x64xf32, #tpu.memory_space<vmem>>, vector<10x64xf32>
      tpu.vector_store %arg21[%c0_110, %c0_111], %265 {strides = array<i32>} : memref<10x64xf32, #tpu.memory_space<vmem>>, vector<10x64xf32>,
    } else {
    }
    %c0 = arith.constant 0 : index
    %c0_1 = arith.constant 0 : index
    %3 = vector.load %arg21[%c0, %c0_1] : memref<10x64xf32, #tpu.memory_space<vmem>>, vector<10x64xf32>
    %4 = tpu.iota {dimensions = array<i32: 0>} : vector<10x10xi32>
    %5 = tpu.iota {dimensions = array<i32: 1>} : vector<10x10xi32>
    %c0_i32_2 = arith.constant 0 : i32
    %6 = vector.broadcast %c0_i32_2 : i32 to vector<10x10xi32>
    %7 = arith.cmpi sge, %4, %6 : vector<10x10xi32>
    %c5_i32 = arith.constant 5 : i32
    %8 = vector.broadcast %c5_i32 : i32 to vector<10x10xi32>
    %9 = arith.cmpi slt, %4, %8 : vector<10x10xi32>
    %10 = arith.andi %7, %9 : vector<10x10xi1>
    %c0_i32_3 = arith.constant 0 : i32
    %11 = vector.broadcast %c0_i32_3 : i32 to vector<10x10xi32>
    %12 = arith.cmpi sge, %5, %11 : vector<10x10xi32>
    %13 = arith.andi %10, %12 : vector<10x10xi1>
    %c5_i32_4 = arith.constant 5 : i32
    %14 = vector.broadcast %c5_i32_4 : i32 to vector<10x10xi32>
    %15 = arith.cmpi slt, %5, %14 : vector<10x10xi32>
    %16 = arith.andi %13, %15 : vector<10x10xi1>
    %c5_i32_5 = arith.constant 5 : i32
    %17 = vector.broadcast %c5_i32_5 : i32 to vector<10x10xi32>
    %18 = arith.cmpi sge, %4, %17 : vector<10x10xi32>
    %c10_i32 = arith.constant 10 : i32
    %19 = vector.broadcast %c10_i32 : i32 to vector<10x10xi32>
    %20 = arith.cmpi slt, %4, %19 : vector<10x10xi32>
    %21 = arith.andi %18, %20 : vector<10x10xi1>
    %c5_i32_6 = arith.constant 5 : i32
    %22 = vector.broadcast %c5_i32_6 : i32 to vector<10x10xi32>
    %23 = arith.cmpi sge, %5, %22 : vector<10x10xi32>
    %24 = arith.andi %21, %23 : vector<10x10xi1>
    %c10_i32_7 = arith.constant 10 : i32
    %25 = vector.broadcast %c10_i32_7 : i32 to vector<10x10xi32>
    %26 = arith.cmpi slt, %5, %25 : vector<10x10xi32>
    %27 = arith.andi %24, %26 : vector<10x10xi1>
    %28 = arith.ori %16, %27 : vector<10x10xi1>
    %c0_8 = arith.constant 0 : index
    %c0_9 = arith.constant 0 : index
    %c0_10 = arith.constant 0 : index
    %29 = vector.load %arg5[%c0_8, %c0_9, %c0_10] : memref<1x1x64xf32, #tpu.memory_space<vmem>>, vector<1x1x64xf32>
    %30 = vector.shape_cast %29 : vector<1x1x64xf32> to vector<1x64xf32>
    %c0_11 = arith.constant 0 : index
    %c0_12 = arith.constant 0 : index
    %c0_13 = arith.constant 0 : index
    %31 = vector.load %arg6[%c0_11, %c0_12, %c0_13] : memref<1x1x64xf32, #tpu.memory_space<vmem>>, vector<1x1x64xf32>
    %32 = vector.shape_cast %31 : vector<1x1x64xf32> to vector<1x64xf32>
    %cst = arith.constant dense<0.000000e+00> : vector<10xf32>
    %33 = vector.multi_reduction <add>, %3, %cst [1] : vector<10x64xf32> to vector<10xf32>
    %34 = vector.shape_cast %33 : vector<10xf32> to vector<10x1xf32>
    %cst_14 = arith.constant 6.400000e+01 : f32
    %35 = vector.broadcast %cst_14 : f32 to vector<10x1xf32>
    %36 = arith.divf %34, %35 : vector<10x1xf32>
    %37 = vector.broadcast %36 : vector<10x1xf32> to vector<10x64xf32>
    %38 = arith.subf %3, %37 : vector<10x64xf32>
    %39 = arith.mulf %38, %38 : vector<10x64xf32>
    %cst_15 = arith.constant dense<0.000000e+00> : vector<10xf32>
    %40 = vector.multi_reduction <add>, %39, %cst_15 [1] : vector<10x64xf32> to vector<10xf32>
    %41 = vector.shape_cast %40 : vector<10xf32> to vector<10x1xf32>
    %cst_16 = arith.constant 6.400000e+01 : f32
    %42 = vector.broadcast %cst_16 : f32 to vector<10x1xf32>
    %43 = arith.divf %41, %42 : vector<10x1xf32>
    %44 = vector.broadcast %36 : vector<10x1xf32> to vector<10x64xf32>
    %45 = arith.subf %3, %44 : vector<10x64xf32>
    %cst_17 = arith.constant 9.99999974E-6 : f32
    %46 = vector.broadcast %cst_17 : f32 to vector<10x1xf32>
    %47 = arith.addf %43, %46 : vector<10x1xf32>
    %48 = math.rsqrt %47 : vector<10x1xf32>
    %49 = vector.broadcast %48 : vector<10x1xf32> to vector<10x64xf32>
    %50 = arith.mulf %45, %49 : vector<10x64xf32>
    %51 = vector.broadcast %30 : vector<1x64xf32> to vector<10x64xf32>
    %52 = arith.mulf %50, %51 : vector<10x64xf32>
    %53 = vector.broadcast %32 : vector<1x64xf32> to vector<10x64xf32>
    %54 = arith.addf %52, %53 : vector<10x64xf32>
    %55 = arith.truncf %54 : vector<10x64xf32> to vector<10x64xbf16>
    %c0_18 = arith.constant 0 : index
    %c0_19 = arith.constant 0 : index
    %c0_20 = arith.constant 0 : index
    %56 = vector.load %arg7[%c0_18, %c0_19, %c0_20] : memref<1x64x192xbf16, #tpu.memory_space<vmem>>, vector<1x64x192xbf16>
    %57 = vector.shape_cast %56 : vector<1x64x192xbf16> to vector<64x192xbf16>
    %cst_21 = arith.constant dense<0.000000e+00> : vector<10x192xf32>
    %58 = tpu.matmul %55, %57, %cst_21 {dimension_numbers = #tpu.dot_dimension_numbers<[1], [0], [0], [1], [0, 0, 1, 1], [], []>} : vector<10x64xbf16>, vector<64x192xbf16>, vector<10x192xf32> -> vector<10x192xf32>
    %c0_22 = arith.constant 0 : index
    %c0_23 = arith.constant 0 : index
    %c0_24 = arith.constant 0 : index
    %59 = vector.load %arg8[%c0_22, %c0_23, %c0_24] : memref<1x1x192xf32, #tpu.memory_space<vmem>>, vector<1x1x192xf32>
    %60 = vector.shape_cast %59 : vector<1x1x192xf32> to vector<1x192xf32>
    %61 = vector.broadcast %60 : vector<1x192xf32> to vector<10x192xf32>
    %62 = arith.addf %58, %61 : vector<10x192xf32>
    %63 = vector.extract_strided_slice %62 {offsets = [0, 0], sizes = [10, 64], strides = [1, 1]} : vector<10x192xf32> to vector<10x64xf32>
    %64 = vector.extract_strided_slice %62 {offsets = [0, 64], sizes = [10, 64], strides = [1, 1]} : vector<10x192xf32> to vector<10x64xf32>
    %65 = vector.extract_strided_slice %62 {offsets = [0, 128], sizes = [10, 64], strides = [1, 1]} : vector<10x192xf32> to vector<10x64xf32>
    %cst_25 = arith.constant 0.000000e+00 : f32
    %66 = vector.broadcast %cst_25 : f32 to vector<10x64xf32>
    %67 = vector.extract_strided_slice %63 {offsets = [0, 0], sizes = [10, 16], strides = [1, 1]} : vector<10x64xf32> to vector<10x16xf32>
    %68 = arith.truncf %67 : vector<10x16xf32> to vector<10x16xbf16>
    %69 = vector.extract_strided_slice %64 {offsets = [0, 0], sizes = [10, 16], strides = [1, 1]} : vector<10x64xf32> to vector<10x16xf32>
    %70 = arith.truncf %69 : vector<10x16xf32> to vector<10x16xbf16>
    %71 = vector.extract_strided_slice %65 {offsets = [0, 0], sizes = [10, 16], strides = [1, 1]} : vector<10x64xf32> to vector<10x16xf32>
    %72 = arith.truncf %71 : vector<10x16xf32> to vector<10x16xbf16>
    %cst_26 = arith.constant dense<0.000000e+00> : vector<10x10xf32>
    %73 = tpu.matmul %68, %70, %cst_26 {dimension_numbers = #tpu.dot_dimension_numbers<[1], [1], [0], [0], [0, 0, 1, 0], [], []>} : vector<10x16xbf16>, vector<10x16xbf16>, vector<10x10xf32> -> vector<10x10xf32>
    %cst_27 = arith.constant -1.000000e+30 : f32
    %74 = vector.broadcast %cst_27 : f32 to vector<10x10xf32>
    %75 = arith.select %28, %73, %74 : vector<10x10xi1>, vector<10x10xf32>
    %cst_28 = arith.constant dense<0xFF800000> : vector<10xf32>
    %76 = vector.multi_reduction <maximumf>, %75, %cst_28 [1] : vector<10x10xf32> to vector<10xf32>
    %77 = vector.shape_cast %76 : vector<10xf32> to vector<10x1xf32>
    %78 = vector.broadcast %77 : vector<10x1xf32> to vector<10x10xf32>
    %79 = arith.subf %75, %78 : vector<10x10xf32>
    %80 = math.exp %79 : vector<10x10xf32>
    %cst_29 = arith.constant 0.000000e+00 : f32
    %81 = vector.broadcast %cst_29 : f32 to vector<10x10xf32>
    %82 = arith.select %28, %80, %81 : vector<10x10xi1>, vector<10x10xf32>
    %cst_30 = arith.constant dense<0.000000e+00> : vector<10xf32>
    %83 = vector.multi_reduction <add>, %82, %cst_30 [1] : vector<10x10xf32> to vector<10xf32>
    %84 = vector.shape_cast %83 : vector<10xf32> to vector<10x1xf32>
    %85 = tpu.reciprocal %84 {approx = true} : vector<10x1xf32> -> vector<10x1xf32>
    %86 = vector.broadcast %85 : vector<10x1xf32> to vector<10x10xf32>
    %87 = arith.mulf %82, %86 : vector<10x10xf32>
    %88 = arith.truncf %87 : vector<10x10xf32> to vector<10x10xbf16>
    %cst_31 = arith.constant dense<0.000000e+00> : vector<10x16xf32>
    %89 = tpu.matmul %88, %72, %cst_31 {dimension_numbers = #tpu.dot_dimension_numbers<[1], [0], [0], [1], [0, 0, 1, 1], [], []>} : vector<10x10xbf16>, vector<10x16xbf16>, vector<10x16xf32> -> vector<10x16xf32>
    %90 = arith.truncf %89 : vector<10x16xf32> to vector<10x16xbf16>
    %c0_32 = arith.constant 0 : index
    %c0_33 = arith.constant 0 : index
    %c0_34 = arith.constant 0 : index
    %91 = vector.load %arg9[%c0_32, %c0_33, %c0_34] : memref<1x64x64xbf16, #tpu.memory_space<vmem>>, vector<1x16x64xbf16>
    %92 = vector.shape_cast %91 : vector<1x16x64xbf16> to vector<16x64xbf16>
    %cst_35 = arith.constant dense<0.000000e+00> : vector<10x64xf32>
    %93 = tpu.matmul %90, %92, %cst_35 {dimension_numbers = #tpu.dot_dimension_numbers<[1], [0], [0], [1], [0, 0, 1, 1], [], []>} : vector<10x16xbf16>, vector<16x64xbf16>, vector<10x64xf32> -> vector<10x64xf32>
    %94 = arith.addf %66, %93 : vector<10x64xf32>
    %95 = vector.extract_strided_slice %63 {offsets = [0, 16], sizes = [10, 16], strides = [1, 1]} : vector<10x64xf32> to vector<10x16xf32>
    %96 = arith.truncf %95 : vector<10x16xf32> to vector<10x16xbf16>
    %97 = vector.extract_strided_slice %64 {offsets = [0, 16], sizes = [10, 16], strides = [1, 1]} : vector<10x64xf32> to vector<10x16xf32>
    %98 = arith.truncf %97 : vector<10x16xf32> to vector<10x16xbf16>
    %99 = vector.extract_strided_slice %65 {offsets = [0, 16], sizes = [10, 16], strides = [1, 1]} : vector<10x64xf32> to vector<10x16xf32>
    %100 = arith.truncf %99 : vector<10x16xf32> to vector<10x16xbf16>
    %cst_36 = arith.constant dense<0.000000e+00> : vector<10x10xf32>
    %101 = tpu.matmul %96, %98, %cst_36 {dimension_numbers = #tpu.dot_dimension_numbers<[1], [1], [0], [0], [0, 0, 1, 0], [], []>} : vector<10x16xbf16>, vector<10x16xbf16>, vector<10x10xf32> -> vector<10x10xf32>
    %cst_37 = arith.constant -1.000000e+30 : f32
    %102 = vector.broadcast %cst_37 : f32 to vector<10x10xf32>
    %103 = arith.select %28, %101, %102 : vector<10x10xi1>, vector<10x10xf32>
    %cst_38 = arith.constant dense<0xFF800000> : vector<10xf32>
    %104 = vector.multi_reduction <maximumf>, %103, %cst_38 [1] : vector<10x10xf32> to vector<10xf32>
    %105 = vector.shape_cast %104 : vector<10xf32> to vector<10x1xf32>
    %106 = vector.broadcast %105 : vector<10x1xf32> to vector<10x10xf32>
    %107 = arith.subf %103, %106 : vector<10x10xf32>
    %108 = math.exp %107 : vector<10x10xf32>
    %cst_39 = arith.constant 0.000000e+00 : f32
    %109 = vector.broadcast %cst_39 : f32 to vector<10x10xf32>
    %110 = arith.select %28, %108, %109 : vector<10x10xi1>, vector<10x10xf32>
    %cst_40 = arith.constant dense<0.000000e+00> : vector<10xf32>
    %111 = vector.multi_reduction <add>, %110, %cst_40 [1] : vector<10x10xf32> to vector<10xf32>
    %112 = vector.shape_cast %111 : vector<10xf32> to vector<10x1xf32>
    %113 = tpu.reciprocal %112 {approx = true} : vector<10x1xf32> -> vector<10x1xf32>
    %114 = vector.broadcast %113 : vector<10x1xf32> to vector<10x10xf32>
    %115 = arith.mulf %110, %114 : vector<10x10xf32>
    %116 = arith.truncf %115 : vector<10x10xf32> to vector<10x10xbf16>
    %cst_41 = arith.constant dense<0.000000e+00> : vector<10x16xf32>
    %117 = tpu.matmul %116, %100, %cst_41 {dimension_numbers = #tpu.dot_dimension_numbers<[1], [0], [0], [1], [0, 0, 1, 1], [], []>} : vector<10x10xbf16>, vector<10x16xbf16>, vector<10x16xf32> -> vector<10x16xf32>
    %118 = arith.truncf %117 : vector<10x16xf32> to vector<10x16xbf16>
    %c0_42 = arith.constant 0 : index
    %c16 = arith.constant 16 : index
    %c0_43 = arith.constant 0 : index
    %119 = vector.load %arg9[%c0_42, %c16, %c0_43] : memref<1x64x64xbf16, #tpu.memory_space<vmem>>, vector<1x16x64xbf16>
    %120 = vector.shape_cast %119 : vector<1x16x64xbf16> to vector<16x64xbf16>
    %cst_44 = arith.constant dense<0.000000e+00> : vector<10x64xf32>
    %121 = tpu.matmul %118, %120, %cst_44 {dimension_numbers = #tpu.dot_dimension_numbers<[1], [0], [0], [1], [0, 0, 1, 1], [], []>} : vector<10x16xbf16>, vector<16x64xbf16>, vector<10x64xf32> -> vector<10x64xf32>
    %122 = arith.addf %94, %121 : vector<10x64xf32>
    %123 = vector.extract_strided_slice %63 {offsets = [0, 32], sizes = [10, 16], strides = [1, 1]} : vector<10x64xf32> to vector<10x16xf32>
    %124 = arith.truncf %123 : vector<10x16xf32> to vector<10x16xbf16>
    %125 = vector.extract_strided_slice %64 {offsets = [0, 32], sizes = [10, 16], strides = [1, 1]} : vector<10x64xf32> to vector<10x16xf32>
    %126 = arith.truncf %125 : vector<10x16xf32> to vector<10x16xbf16>
    %127 = vector.extract_strided_slice %65 {offsets = [0, 32], sizes = [10, 16], strides = [1, 1]} : vector<10x64xf32> to vector<10x16xf32>
    %128 = arith.truncf %127 : vector<10x16xf32> to vector<10x16xbf16>
    %cst_45 = arith.constant dense<0.000000e+00> : vector<10x10xf32>
    %129 = tpu.matmul %124, %126, %cst_45 {dimension_numbers = #tpu.dot_dimension_numbers<[1], [1], [0], [0], [0, 0, 1, 0], [], []>} : vector<10x16xbf16>, vector<10x16xbf16>, vector<10x10xf32> -> vector<10x10xf32>
    %cst_46 = arith.constant -1.000000e+30 : f32
    %130 = vector.broadcast %cst_46 : f32 to vector<10x10xf32>
    %131 = arith.select %28, %129, %130 : vector<10x10xi1>, vector<10x10xf32>
    %cst_47 = arith.constant dense<0xFF800000> : vector<10xf32>
    %132 = vector.multi_reduction <maximumf>, %131, %cst_47 [1] : vector<10x10xf32> to vector<10xf32>
    %133 = vector.shape_cast %132 : vector<10xf32> to vector<10x1xf32>
    %134 = vector.broadcast %133 : vector<10x1xf32> to vector<10x10xf32>
    %135 = arith.subf %131, %134 : vector<10x10xf32>
    %136 = math.exp %135 : vector<10x10xf32>
    %cst_48 = arith.constant 0.000000e+00 : f32
    %137 = vector.broadcast %cst_48 : f32 to vector<10x10xf32>
    %138 = arith.select %28, %136, %137 : vector<10x10xi1>, vector<10x10xf32>
    %cst_49 = arith.constant dense<0.000000e+00> : vector<10xf32>
    %139 = vector.multi_reduction <add>, %138, %cst_49 [1] : vector<10x10xf32> to vector<10xf32>
    %140 = vector.shape_cast %139 : vector<10xf32> to vector<10x1xf32>
    %141 = tpu.reciprocal %140 {approx = true} : vector<10x1xf32> -> vector<10x1xf32>
    %142 = vector.broadcast %141 : vector<10x1xf32> to vector<10x10xf32>
    %143 = arith.mulf %138, %142 : vector<10x10xf32>
    %144 = arith.truncf %143 : vector<10x10xf32> to vector<10x10xbf16>
    %cst_50 = arith.constant dense<0.000000e+00> : vector<10x16xf32>
    %145 = tpu.matmul %144, %128, %cst_50 {dimension_numbers = #tpu.dot_dimension_numbers<[1], [0], [0], [1], [0, 0, 1, 1], [], []>} : vector<10x10xbf16>, vector<10x16xbf16>, vector<10x16xf32> -> vector<10x16xf32>
    %146 = arith.truncf %145 : vector<10x16xf32> to vector<10x16xbf16>
    %c0_51 = arith.constant 0 : index
    %c32 = arith.constant 32 : index
    %c0_52 = arith.constant 0 : index
    %147 = vector.load %arg9[%c0_51, %c32, %c0_52] : memref<1x64x64xbf16, #tpu.memory_space<vmem>>, vector<1x16x64xbf16>
    %148 = vector.shape_cast %147 : vector<1x16x64xbf16> to vector<16x64xbf16>
    %cst_53 = arith.constant dense<0.000000e+00> : vector<10x64xf32>
    %149 = tpu.matmul %146, %148, %cst_53 {dimension_numbers = #tpu.dot_dimension_numbers<[1], [0], [0], [1], [0, 0, 1, 1], [], []>} : vector<10x16xbf16>, vector<16x64xbf16>, vector<10x64xf32> -> vector<10x64xf32>
    %150 = arith.addf %122, %149 : vector<10x64xf32>
    %151 = vector.extract_strided_slice %63 {offsets = [0, 48], sizes = [10, 16], strides = [1, 1]} : vector<10x64xf32> to vector<10x16xf32>
    %152 = arith.truncf %151 : vector<10x16xf32> to vector<10x16xbf16>
    %153 = vector.extract_strided_slice %64 {offsets = [0, 48], sizes = [10, 16], strides = [1, 1]} : vector<10x64xf32> to vector<10x16xf32>
    %154 = arith.truncf %153 : vector<10x16xf32> to vector<10x16xbf16>
    %155 = vector.extract_strided_slice %65 {offsets = [0, 48], sizes = [10, 16], strides = [1, 1]} : vector<10x64xf32> to vector<10x16xf32>
    %156 = arith.truncf %155 : vector<10x16xf32> to vector<10x16xbf16>
    %cst_54 = arith.constant dense<0.000000e+00> : vector<10x10xf32>
    %157 = tpu.matmul %152, %154, %cst_54 {dimension_numbers = #tpu.dot_dimension_numbers<[1], [1], [0], [0], [0, 0, 1, 0], [], []>} : vector<10x16xbf16>, vector<10x16xbf16>, vector<10x10xf32> -> vector<10x10xf32>
    %cst_55 = arith.constant -1.000000e+30 : f32
    %158 = vector.broadcast %cst_55 : f32 to vector<10x10xf32>
    %159 = arith.select %28, %157, %158 : vector<10x10xi1>, vector<10x10xf32>
    %cst_56 = arith.constant dense<0xFF800000> : vector<10xf32>
    %160 = vector.multi_reduction <maximumf>, %159, %cst_56 [1] : vector<10x10xf32> to vector<10xf32>
    %161 = vector.shape_cast %160 : vector<10xf32> to vector<10x1xf32>
    %162 = vector.broadcast %161 : vector<10x1xf32> to vector<10x10xf32>
    %163 = arith.subf %159, %162 : vector<10x10xf32>
    %164 = math.exp %163 : vector<10x10xf32>
    %cst_57 = arith.constant 0.000000e+00 : f32
    %165 = vector.broadcast %cst_57 : f32 to vector<10x10xf32>
    %166 = arith.select %28, %164, %165 : vector<10x10xi1>, vector<10x10xf32>
    %cst_58 = arith.constant dense<0.000000e+00> : vector<10xf32>
    %167 = vector.multi_reduction <add>, %166, %cst_58 [1] : vector<10x10xf32> to vector<10xf32>
    %168 = vector.shape_cast %167 : vector<10xf32> to vector<10x1xf32>
    %169 = tpu.reciprocal %168 {approx = true} : vector<10x1xf32> -> vector<10x1xf32>
    %170 = vector.broadcast %169 : vector<10x1xf32> to vector<10x10xf32>
    %171 = arith.mulf %166, %170 : vector<10x10xf32>
    %172 = arith.truncf %171 : vector<10x10xf32> to vector<10x10xbf16>
    %cst_59 = arith.constant dense<0.000000e+00> : vector<10x16xf32>
    %173 = tpu.matmul %172, %156, %cst_59 {dimension_numbers = #tpu.dot_dimension_numbers<[1], [0], [0], [1], [0, 0, 1, 1], [], []>} : vector<10x10xbf16>, vector<10x16xbf16>, vector<10x16xf32> -> vector<10x16xf32>
    %174 = arith.truncf %173 : vector<10x16xf32> to vector<10x16xbf16>
    %c0_60 = arith.constant 0 : index
    %c48 = arith.constant 48 : index
    %c0_61 = arith.constant 0 : index
    %175 = vector.load %arg9[%c0_60, %c48, %c0_61] : memref<1x64x64xbf16, #tpu.memory_space<vmem>>, vector<1x16x64xbf16>
    %176 = vector.shape_cast %175 : vector<1x16x64xbf16> to vector<16x64xbf16>
    %cst_62 = arith.constant dense<0.000000e+00> : vector<10x64xf32>
    %177 = tpu.matmul %174, %176, %cst_62 {dimension_numbers = #tpu.dot_dimension_numbers<[1], [0], [0], [1], [0, 0, 1, 1], [], []>} : vector<10x16xbf16>, vector<16x64xbf16>, vector<10x64xf32> -> vector<10x64xf32>
    %178 = arith.addf %150, %177 : vector<10x64xf32>
    %179 = arith.addf %3, %178 : vector<10x64xf32>
    %c0_63 = arith.constant 0 : index
    %c0_64 = arith.constant 0 : index
    %c0_65 = arith.constant 0 : index
    %180 = vector.load %arg10[%c0_63, %c0_64, %c0_65] : memref<1x1x64xf32, #tpu.memory_space<vmem>>, vector<1x1x64xf32>
    %181 = vector.shape_cast %180 : vector<1x1x64xf32> to vector<1x64xf32>
    %182 = vector.broadcast %181 : vector<1x64xf32> to vector<10x64xf32>
    %183 = arith.addf %179, %182 : vector<10x64xf32>
    %c0_66 = arith.constant 0 : index
    %c0_67 = arith.constant 0 : index
    %c0_68 = arith.constant 0 : index
    %184 = vector.load %arg11[%c0_66, %c0_67, %c0_68] : memref<1x1x64xf32, #tpu.memory_space<vmem>>, vector<1x1x64xf32>
    %185 = vector.shape_cast %184 : vector<1x1x64xf32> to vector<1x64xf32>
    %c0_69 = arith.constant 0 : index
    %c0_70 = arith.constant 0 : index
    %c0_71 = arith.constant 0 : index
    %186 = vector.load %arg12[%c0_69, %c0_70, %c0_71] : memref<1x1x64xf32, #tpu.memory_space<vmem>>, vector<1x1x64xf32>
    %187 = vector.shape_cast %186 : vector<1x1x64xf32> to vector<1x64xf32>
    %cst_72 = arith.constant dense<0.000000e+00> : vector<10xf32>
    %188 = vector.multi_reduction <add>, %183, %cst_72 [1] : vector<10x64xf32> to vector<10xf32>
    %189 = vector.shape_cast %188 : vector<10xf32> to vector<10x1xf32>
    %cst_73 = arith.constant 6.400000e+01 : f32
    %190 = vector.broadcast %cst_73 : f32 to vector<10x1xf32>
    %191 = arith.divf %189, %190 : vector<10x1xf32>
    %192 = vector.broadcast %191 : vector<10x1xf32> to vector<10x64xf32>
    %193 = arith.subf %183, %192 : vector<10x64xf32>
    %194 = arith.mulf %193, %193 : vector<10x64xf32>
    %cst_74 = arith.constant dense<0.000000e+00> : vector<10xf32>
    %195 = vector.multi_reduction <add>, %194, %cst_74 [1] : vector<10x64xf32> to vector<10xf32>
    %196 = vector.shape_cast %195 : vector<10xf32> to vector<10x1xf32>
    %cst_75 = arith.constant 6.400000e+01 : f32
    %197 = vector.broadcast %cst_75 : f32 to vector<10x1xf32>
    %198 = arith.divf %196, %197 : vector<10x1xf32>
    %199 = vector.broadcast %191 : vector<10x1xf32> to vector<10x64xf32>
    %200 = arith.subf %183, %199 : vector<10x64xf32>
    %cst_76 = arith.constant 9.99999974E-6 : f32
    %201 = vector.broadcast %cst_76 : f32 to vector<10x1xf32>
    %202 = arith.addf %198, %201 : vector<10x1xf32>
    %203 = math.rsqrt %202 : vector<10x1xf32>
    %204 = vector.broadcast %203 : vector<10x1xf32> to vector<10x64xf32>
    %205 = arith.mulf %200, %204 : vector<10x64xf32>
    %206 = vector.broadcast %185 : vector<1x64xf32> to vector<10x64xf32>
    %207 = arith.mulf %205, %206 : vector<10x64xf32>
    %208 = vector.broadcast %187 : vector<1x64xf32> to vector<10x64xf32>
    %209 = arith.addf %207, %208 : vector<10x64xf32>
    %210 = arith.truncf %209 : vector<10x64xf32> to vector<10x64xbf16>
    %c0_77 = arith.constant 0 : index
    %c0_78 = arith.constant 0 : index
    %c0_79 = arith.constant 0 : index
    %211 = vector.load %arg13[%c0_77, %c0_78, %c0_79] : memref<1x64x128xbf16, #tpu.memory_space<vmem>>, vector<1x64x128xbf16>
    %212 = vector.shape_cast %211 : vector<1x64x128xbf16> to vector<64x128xbf16>
    %cst_80 = arith.constant dense<0.000000e+00> : vector<10x128xf32>
    %213 = tpu.matmul %210, %212, %cst_80 {dimension_numbers = #tpu.dot_dimension_numbers<[1], [0], [0], [1], [0, 0, 1, 1], [], []>} : vector<10x64xbf16>, vector<64x128xbf16>, vector<10x128xf32> -> vector<10x128xf32>
    %c0_81 = arith.constant 0 : index
    %c0_82 = arith.constant 0 : index
    %c0_83 = arith.constant 0 : index
    %214 = vector.load %arg14[%c0_81, %c0_82, %c0_83] : memref<1x1x128xf32, #tpu.memory_space<vmem>>, vector<1x1x128xf32>
    %215 = vector.shape_cast %214 : vector<1x1x128xf32> to vector<1x128xf32>
    %216 = vector.broadcast %215 : vector<1x128xf32> to vector<10x128xf32>
    %217 = arith.addf %213, %216 : vector<10x128xf32>
    %cst_84 = arith.constant 1.702000e+00 : f32
    %218 = vector.broadcast %cst_84 : f32 to vector<10x128xf32>
    %219 = arith.mulf %218, %217 : vector<10x128xf32>
    %220 = arith.negf %219 : vector<10x128xf32>
    %221 = math.exp %220 : vector<10x128xf32>
    %cst_85 = arith.constant 1.000000e+00 : f32
    %222 = vector.broadcast %cst_85 : f32 to vector<10x128xf32>
    %223 = arith.addf %222, %221 : vector<10x128xf32>
    %224 = arith.divf %222, %223 : vector<10x128xf32>
    %225 = arith.mulf %217, %224 : vector<10x128xf32>
    %226 = arith.truncf %225 : vector<10x128xf32> to vector<10x128xbf16>
    %c0_86 = arith.constant 0 : index
    %c0_87 = arith.constant 0 : index
    %c0_88 = arith.constant 0 : index
    %227 = vector.load %arg15[%c0_86, %c0_87, %c0_88] : memref<1x128x64xbf16, #tpu.memory_space<vmem>>, vector<1x128x64xbf16>
    %228 = vector.shape_cast %227 : vector<1x128x64xbf16> to vector<128x64xbf16>
    %cst_89 = arith.constant dense<0.000000e+00> : vector<10x64xf32>
    %229 = tpu.matmul %226, %228, %cst_89 {dimension_numbers = #tpu.dot_dimension_numbers<[1], [0], [0], [1], [0, 0, 1, 1], [], []>} : vector<10x128xbf16>, vector<128x64xbf16>, vector<10x64xf32> -> vector<10x64xf32>
    %230 = arith.addf %183, %229 : vector<10x64xf32>
    %c0_90 = arith.constant 0 : index
    %c0_91 = arith.constant 0 : index
    %c0_92 = arith.constant 0 : index
    %231 = vector.load %arg16[%c0_90, %c0_91, %c0_92] : memref<1x1x64xf32, #tpu.memory_space<vmem>>, vector<1x1x64xf32>
    %232 = vector.shape_cast %231 : vector<1x1x64xf32> to vector<1x64xf32>
    %233 = vector.broadcast %232 : vector<1x64xf32> to vector<10x64xf32>
    %234 = arith.addf %230, %233 : vector<10x64xf32>
    %c0_93 = arith.constant 0 : index
    %c0_94 = arith.constant 0 : index
    %235 = vector.load %arg21[%c0_93, %c0_94] : memref<10x64xf32, #tpu.memory_space<vmem>>, vector<10x64xf32>
    tpu.vector_store %arg21[%c0_93, %c0_94], %234 {strides = array<i32>} : memref<10x64xf32, #tpu.memory_space<vmem>>, vector<10x64xf32>,
    %c1_i32 = arith.constant 1 : i32
    %236 = arith.cmpi eq, %arg0, %c1_i32 : i32
    %237 = arith.extui %236 : i1 to i32
    %c0_i32_95 = arith.constant 0 : i32
    %238 = arith.cmpi ne, %237, %c0_i32_95 : i32
    scf.if %238 {
      %239 = tpu.iota {dimensions = array<i32: 0>} : vector<2x10xi32>
      %240 = tpu.iota {dimensions = array<i32: 1>} : vector<2x10xi32>
      %c5_i32_96 = arith.constant 5 : i32
      %241 = vector.broadcast %c5_i32_96 : i32 to vector<2x10xi32>
      %242 = arith.muli %239, %241 : vector<2x10xi32>
      %243 = arith.cmpi eq, %240, %242 : vector<2x10xi32>
      %244 = arith.extui %243 : vector<2x10xi1> to vector<2x10xi32>
      %245 = arith.sitofp %244 : vector<2x10xi32> to vector<2x10xf32>
      %cst_97 = arith.constant dense<0.000000e+00> : vector<2x64xf32>
      %246 = tpu.matmul %245, %234, %cst_97 {dimension_numbers = #tpu.dot_dimension_numbers<[1], [0], [0], [1], [0, 0, 1, 1], [], []>} : vector<2x10xf32>, vector<10x64xf32>, vector<2x64xf32> -> vector<2x64xf32>
      %c0_98 = arith.constant 0 : index
      %c0_99 = arith.constant 0 : index
      %247 = vector.load %arg17[%c0_98, %c0_99] : memref<1x64xf32, #tpu.memory_space<vmem>>, vector<1x64xf32>
      %c0_100 = arith.constant 0 : index
      %c0_101 = arith.constant 0 : index
      %248 = vector.load %arg18[%c0_100, %c0_101] : memref<1x64xf32, #tpu.memory_space<vmem>>, vector<1x64xf32>
      %cst_102 = arith.constant dense<0.000000e+00> : vector<2xf32>
      %249 = vector.multi_reduction <add>, %246, %cst_102 [1] : vector<2x64xf32> to vector<2xf32>
      %250 = vector.shape_cast %249 : vector<2xf32> to vector<2x1xf32>
      %cst_103 = arith.constant 6.400000e+01 : f32
      %251 = vector.broadcast %cst_103 : f32 to vector<2x1xf32>
      %252 = arith.divf %250, %251 : vector<2x1xf32>
      %253 = vector.broadcast %252 : vector<2x1xf32> to vector<2x64xf32>
      %254 = arith.subf %246, %253 : vector<2x64xf32>
      %255 = arith.mulf %254, %254 : vector<2x64xf32>
      %cst_104 = arith.constant dense<0.000000e+00> : vector<2xf32>
      %256 = vector.multi_reduction <add>, %255, %cst_104 [1] : vector<2x64xf32> to vector<2xf32>
      %257 = vector.shape_cast %256 : vector<2xf32> to vector<2x1xf32>
      %cst_105 = arith.constant 6.400000e+01 : f32
      %258 = vector.broadcast %cst_105 : f32 to vector<2x1xf32>
      %259 = arith.divf %257, %258 : vector<2x1xf32>
      %260 = vector.broadcast %252 : vector<2x1xf32> to vector<2x64xf32>
      %261 = arith.subf %246, %260 : vector<2x64xf32>
      %cst_106 = arith.constant 9.99999974E-6 : f32
      %262 = vector.broadcast %cst_106 : f32 to vector<2x1xf32>
      %263 = arith.addf %259, %262 : vector<2x1xf32>
      %264 = math.rsqrt %263 : vector<2x1xf32>
      %265 = vector.broadcast %264 : vector<2x1xf32> to vector<2x64xf32>
      %266 = arith.mulf %261, %265 : vector<2x64xf32>
      %267 = vector.broadcast %247 : vector<1x64xf32> to vector<2x64xf32>
      %268 = arith.mulf %266, %267 : vector<2x64xf32>
      %269 = vector.broadcast %248 : vector<1x64xf32> to vector<2x64xf32>
      %270 = arith.addf %268, %269 : vector<2x64xf32>
      %271 = arith.truncf %270 : vector<2x64xf32> to vector<2x64xbf16>
      %c0_107 = arith.constant 0 : index
      %c0_108 = arith.constant 0 : index
      %272 = vector.load %arg19[%c0_107, %c0_108] : memref<64x128xbf16, #tpu.memory_space<vmem>>, vector<64x128xbf16>
      %cst_109 = arith.constant dense<0.000000e+00> : vector<2x128xf32>
      %273 = tpu.matmul %271, %272, %cst_109 {dimension_numbers = #tpu.dot_dimension_numbers<[1], [0], [0], [1], [0, 0, 1, 1], [], []>} : vector<2x64xbf16>, vector<64x128xbf16>, vector<2x128xf32> -> vector<2x128xf32>
      %274 = arith.mulf %273, %273 : vector<2x128xf32>
      %cst_110 = arith.constant dense<0.000000e+00> : vector<2xf32>
      %275 = vector.multi_reduction <add>, %274, %cst_110 [1] : vector<2x128xf32> to vector<2xf32>
      %276 = vector.shape_cast %275 : vector<2xf32> to vector<2x1xf32>
      %cst_111 = arith.constant 9.99999996E-13 : f32
      %277 = vector.broadcast %cst_111 : f32 to vector<2x1xf32>
      %278 = arith.addf %276, %277 : vector<2x1xf32>
      %279 = math.rsqrt %278 : vector<2x1xf32>
      %280 = vector.broadcast %279 : vector<2x1xf32> to vector<2x128xf32>
      %281 = arith.mulf %273, %280 : vector<2x128xf32>
      %c0_112 = arith.constant 0 : index
      %c0_113 = arith.constant 0 : index
      %282 = vector.load %arg20[%c0_112, %c0_113] : memref<2x128xf32, #tpu.memory_space<vmem>>, vector<2x128xf32>
      tpu.vector_store %arg20[%c0_112, %c0_113], %281 {strides = array<i32>} : memref<2x128xf32, #tpu.memory_space<vmem>>, vector<2x128xf32>,
    } else {
    }
    return
  }
  func.func @transform_0(%arg0: i32) -> (i32, i32) {
    %c0_i32 = arith.constant 0 : i32
    %c0_i32_0 = arith.constant 0 : i32
    %c0_i32_1 = arith.constant 0 : i32
    return %c0_i32, %c0_i32_0 : i32, i32
  }
  func.func @transform_1(%arg0: i32) -> (i32, i32) {
    %c0_i32 = arith.constant 0 : i32
    %c0_i32_0 = arith.constant 0 : i32
    %c0_i32_1 = arith.constant 0 : i32
    return %c0_i32, %c0_i32_0 : i32, i32
  }
  func.func @transform_2(%arg0: i32) -> (i32, i32) {
    %c0_i32 = arith.constant 0 : i32
    %c0_i32_0 = arith.constant 0 : i32
    %c0_i32_1 = arith.constant 0 : i32
    return %c0_i32, %c0_i32_0 : i32, i32
  }
  func.func @transform_3(%arg0: i32) -> (i32, i32) {
    %c0_i32 = arith.constant 0 : i32
    %c0_i32_0 = arith.constant 0 : i32
    %c0_i32_1 = arith.constant 0 : i32
    return %c0_i32, %c0_i32_0 : i32, i32
  }
  func.func @transform_4(%arg0: i32) -> (i32, i32, i32) {
    %c0_i32 = arith.constant 0 : i32
    %c0_i32_0 = arith.constant 0 : i32
    %c0_i32_1 = arith.constant 0 : i32
    return %arg0, %c0_i32, %c0_i32_0 : i32, i32, i32
  }
  func.func @transform_5(%arg0: i32) -> (i32, i32, i32) {
    %c0_i32 = arith.constant 0 : i32
    %c0_i32_0 = arith.constant 0 : i32
    %c0_i32_1 = arith.constant 0 : i32
    return %arg0, %c0_i32, %c0_i32_0 : i32, i32, i32
  }
  func.func @transform_6(%arg0: i32) -> (i32, i32, i32) {
    %c0_i32 = arith.constant 0 : i32
    %c0_i32_0 = arith.constant 0 : i32
    %c0_i32_1 = arith.constant 0 : i32
    return %arg0, %c0_i32, %c0_i32_0 : i32, i32, i32
  }
  func.func @transform_7(%arg0: i32) -> (i32, i32, i32) {
    %c0_i32 = arith.constant 0 : i32
    %c0_i32_0 = arith.constant 0 : i32
    %c0_i32_1 = arith.constant 0 : i32
    return %arg0, %c0_i32, %c0_i32_0 : i32, i32, i32
  }
  func.func @transform_8(%arg0: i32) -> (i32, i32, i32) {
    %c0_i32 = arith.constant 0 : i32
    %c0_i32_0 = arith.constant 0 : i32
    %c0_i32_1 = arith.constant 0 : i32
    return %arg0, %c0_i32, %c0_i32_0 : i32, i32, i32
  }
  func.func @transform_9(%arg0: i32) -> (i32, i32, i32) {
    %c0_i32 = arith.constant 0 : i32
    %c0_i32_0 = arith.constant 0 : i32
    %c0_i32_1 = arith.constant 0 : i32
    return %arg0, %c0_i32, %c0_i32_0 : i32, i32, i32
  }
  func.func @transform_10(%arg0: i32) -> (i32, i32, i32) {
    %c0_i32 = arith.constant 0 : i32
    %c0_i32_0 = arith.constant 0 : i32
    %c0_i32_1 = arith.constant 0 : i32
    return %arg0, %c0_i32, %c0_i32_0 : i32, i32, i32
  }
  func.func @transform_11(%arg0: i32) -> (i32, i32, i32) {
    %c0_i32 = arith.constant 0 : i32
    %c0_i32_0 = arith.constant 0 : i32
    %c0_i32_1 = arith.constant 0 : i32
    return %arg0, %c0_i32, %c0_i32_0 : i32, i32, i32
  }
  func.func @transform_12(%arg0: i32) -> (i32, i32, i32) {
    %c0_i32 = arith.constant 0 : i32
    %c0_i32_0 = arith.constant 0 : i32
    %c0_i32_1 = arith.constant 0 : i32
    return %arg0, %c0_i32, %c0_i32_0 : i32, i32, i32
  }
  func.func @transform_13(%arg0: i32) -> (i32, i32, i32) {
    %c0_i32 = arith.constant 0 : i32
    %c0_i32_0 = arith.constant 0 : i32
    %c0_i32_1 = arith.constant 0 : i32
    return %arg0, %c0_i32, %c0_i32_0 : i32, i32, i32
  }
  func.func @transform_14(%arg0: i32) -> (i32, i32, i32) {
    %c0_i32 = arith.constant 0 : i32
    %c0_i32_0 = arith.constant 0 : i32
    %c0_i32_1 = arith.constant 0 : i32
    return %arg0, %c0_i32, %c0_i32_0 : i32, i32, i32
  }
  func.func @transform_15(%arg0: i32) -> (i32, i32, i32) {
    %c0_i32 = arith.constant 0 : i32
    %c0_i32_0 = arith.constant 0 : i32
    %c0_i32_1 = arith.constant 0 : i32
    return %arg0, %c0_i32, %c0_i32_0 : i32, i32, i32
  }
  func.func @transform_16(%arg0: i32) -> (i32, i32) {
    %c0_i32 = arith.constant 0 : i32
    %c0_i32_0 = arith.constant 0 : i32
    %c0_i32_1 = arith.constant 0 : i32
    return %c0_i32, %c0_i32_0 : i32, i32
  }
  func.func @transform_17(%arg0: i32) -> (i32, i32) {
    %c0_i32 = arith.constant 0 : i32
    %c0_i32_0 = arith.constant 0 : i32
    %c0_i32_1 = arith.constant 0 : i32
    return %c0_i32, %c0_i32_0 : i32, i32
  }
  func.func @transform_18(%arg0: i32) -> (i32, i32) {
    %c0_i32 = arith.constant 0 : i32
    %c0_i32_0 = arith.constant 0 : i32
    %c0_i32_1 = arith.constant 0 : i32
    return %c0_i32, %c0_i32_0 : i32, i32
  }
  func.func @transform_19(%arg0: i32) -> (i32, i32) {
    %c0_i32 = arith.constant 0 : i32
    %c0_i32_0 = arith.constant 0 : i32
    %c0_i32_1 = arith.constant 0 : i32
    return %c0_i32, %c0_i32_0 : i32, i32
  }
}

</mosaic_0001>

<bundles_post_ra>
// kernel: tile.0
= control target key start
LH: loop header
LB: loop body
LE: loop exit
PB: predicated region body
PF: predicated region fallthrough
CT: control target
= control target key end

     0   :  { %vm85_vm0 = vcmask 1044484   ;;  %vm87_vm1 = vcmask 39936   ;;  %vm97_vm2 = vcmask 80936   ;;  %v119_v18 = vmov 0.0   ;;  %s148_s0 = inlined_call_operand.vmem [shape: bf16[2,5,5], index: 0, kind: input, shape index: {}]   ;;  %s149_s1 = inlined_call_operand.vmem [shape: bf16[10,5], index: 1, kind: output, shape index: {}]  }
   0x1   :  { %v112_v0 = vld [vmem:[%s148_s0 + $0x4] sm:$0x1]  ;;  %v113_v1 = vld [vmem:[%s148_s0 + $0x3] sm:$0x1]  ;;  %v114_v2 = vld [vmem:[%s148_s0 + $0x2] sm:$0x1] }
   0x2   :  { %v18_v3 = vunpack.c.l.bf16 %v112_v0  ;;  %v34_v4 = vunpack.c.l.bf16 %v113_v1  ;;  %v50_v5 = vunpack.c.l.bf16 %v114_v2  ;;  %v115_v6 = vld [vmem:[%s148_s0 + $0x1] sm:$0x1]  ;;  %v78_v7 = vld [vmem:[%s148_s0] sm:$0x1]  ;;  %s118_s0 = smov 5  }
   0x3   :  { %v65_v8 = vunpack.c.l.bf16 %v115_v6  ;;  %v79_v9 = vunpack.c.l.bf16 %v78_v7 }
   0x4   :  { %21 = vst [vmem:[#allocation1 + $0x20] sm:$0x3] %v18_v3  ;;  %37 = vst [vmem:[#allocation1 + $0x18] sm:$0x3] %v34_v4 }
   0x5   :  { %53 = vst [vmem:[#allocation1 + $0x10] sm:$0x3] %v50_v5  ;;  %68 = vst [vmem:[#allocation1 + $0x8] sm:$0x3] %v65_v8 }
   0x6   :  { %81 = vst [vmem:[#allocation1] sm:$0x3] %v79_v9 }
   0xb   :  { %v84_v10 = vld [vmem:[#allocation1 + $0x1c] sm:$0x10]   ;;  %v92_v11 = vld [vmem:[#allocation1 + $0x1d] sm:$0x10]  }
   0xd   :  { %v82_v12 = vld [vmem:[#allocation1] ss:$8 sm:$0xf]   ;;  %v90_v13 = vld [vmem:[#allocation1 + $0x1] ss:$8 sm:$0xf]  }
   0xe   :  { %v86_v14 = vsel %vm85_vm0, %v84_v10, %v82_v12  ;;  %v94_v15 = vsel %vm85_vm0, %v92_v11, %v90_v13 }
   0xf   :  { %95 = vrot.lane.b32.xlu0 %v94_v15, %s118_s0  ;;  %88 = vst.msk [vmem:[#allocation0] sm:$0x1f] %vm87_vm1, %v86_v14  }
  0x81   :  { %v96_v16 = vpop.permute.xlu0 %95  }
  0x82   :  { %98 = vst.msk [vmem:[#allocation0] sm:$0x1f] %vm97_vm2, %v96_v16  }
  0x89   :  { %v104_v17 = vld [vmem:[#allocation0] sm:$0xff] }
  0x8a   :  { %v105_v19 = vpack.c.bf16 %v119_v18, %v104_v17 }
  0x8c   :  { %108 = vst [vmem:[%s149_s1] sm:$0xf] %v105_v19 }

// kernel: image_encoder_forward.1
= control target key start
LH: loop header
LB: loop body
LE: loop exit
PB: predicated region body
PF: predicated region fallthrough
CT: control target
= control target key end

     0   :  { %s3506_s0 = inlined_call_operand.vmem [shape: bf16[10,197], index: 0, kind: input, shape index: {}]   ;;  %s3507_s1 = inlined_call_operand.vmem [shape: bf16[197,64], index: 1, kind: input, shape index: {}]   ;;  %s3508_s2 = inlined_call_operand.vmem [shape: f32[1,64], index: 2, kind: input, shape index: {}]   ;;  %s3509_s3 = inlined_call_operand.vmem [shape: f32[1,64], index: 3, kind: input, shape index: {}]   ;;  %s3510_s4 = inlined_call_operand.vmem [shape: f32[2,1,64], index: 4, kind: input, shape index: {}]   ;;  %s3511_s5 = inlined_call_operand.vmem [shape: f32[2,1,64], index: 5, kind: input, shape index: {}]   ;;  %s3512_s6 = inlined_call_operand.vmem [shape: bf16[2,64,192], index: 6, kind: input, shape index: {}]   ;;  %s3513_s7 = inlined_call_operand.vmem [shape: f32[2,1,192], index: 7, kind: input, shape index: {}]   ;;  %s3514_s8 = inlined_call_operand.vmem [shape: bf16[2,64,64], index: 8, kind: input, shape index: {}]   ;;  %s3515_s9 = inlined_call_operand.vmem [shape: f32[2,1,64], index: 9, kind: input, shape index: {}]   ;;  %s3516_s10 = inlined_call_operand.vmem [shape: f32[2,1,64], index: 10, kind: input, shape index: {}]   ;;  %s3517_s11 = inlined_call_operand.vmem [shape: f32[2,1,64], index: 11, kind: input, shape index: {}]   ;;  %s3518_s12 = inlined_call_operand.vmem [shape: bf16[2,64,128], index: 12, kind: input, shape index: {}]   ;;  %s3519_s13 = inlined_call_operand.vmem [shape: f32[2,1,128], index: 13, kind: input, shape index: {}]   ;;  %s3520_s14 = inlined_call_operand.vmem [shape: bf16[2,128,64], index: 14, kind: input, shape index: {}]   ;;  %s3521_s15 = inlined_call_operand.vmem [shape: f32[2,1,64], index: 15, kind: input, shape index: {}]   ;;  %s3522_s16 = inlined_call_operand.vmem [shape: f32[1,64], index: 16, kind: input, shape index: {}]   ;;  %s3523_s17 = inlined_call_operand.vmem [shape: f32[1,64], index: 17, kind: input, shape index: {}]   ;;  %s3524_s18 = inlined_call_operand.vmem [shape: bf16[64,128], index: 18, kind: input, shape index: {}]   ;;  %s3525_s19 = inlined_call_operand.hbm [shape: f32[2,128], index: 19, kind: output, shape index: {}]  }
   0x1   :  { %3531 = sst [smem:[#allocation7_spill]] %s3506_s0 }
   0x2   :  { %3532 = sst [smem:[#allocation8_spill]] %s3507_s1 }
   0x3   :  { %3533 = sst [smem:[#allocation9_spill]] %s3508_s2 }
   0x4   :  { %3534 = sst [smem:[#allocation10_spill]] %s3509_s3 }
   0x5   :  { %3535 = sst [smem:[#allocation11_spill]] %s3512_s6 }
   0x6   :  { %3536 = sst [smem:[#allocation12_spill]] %s3513_s7 }
   0x7   :  { %3537 = sst [smem:[#allocation13_spill]] %s3514_s8 }
   0x8   :  { %3538 = sst [smem:[#allocation14_spill]] %s3522_s16 }
   0x9   :  { %3539 = sst [smem:[#allocation15_spill]] %s3523_s17 }
   0xa   :  { %3540 = sst [smem:[#allocation16_spill]] %s3524_s18 }
   0xb   :  { %3541 = sst [smem:[#allocation17_spill]] %s3525_s19 }
   0xc   :  { %24 = vsyncpa [#allocation4], 0  ;;  %s3076_s0 = smov 0  }
   0xd LB: > { %3542 = sst [smem:[#allocation6_spill]] %s2959_s0  ;;  %s3082_s30 = sadd.s32 4294967295, %s2959_s0   ;;  %s2959_s0 = sphi %s3076_s0, %s30_s0  }
   0xe   : > { %p2528_p0 = scmp.ge.s32.totalorder %s2959_s0, 1  ;;  %p628_p1 = scmp.lt.s32.totalorder %s2959_s0, 3 }
  0x10   : > { %p629_p2 = pnand %p2528_p0, %p628_p1 }
  0x11   : > { %p719_p3 = scmp.lt.s32.totalorder (!%p629_p2), %s3082_s30, 1  ;;  %s3543_s6 = sld [smem:[#allocation11_spill]] (!%p629_p2) }
  0x12   : > { %632 = sbr.rel (%p629_p2) target bundleno = 5031 (0x13a7), region = 96  ;;  %s3544_s7 = sld [smem:[#allocation12_spill]] (!%p629_p2) }
  0x13   : > { %s3545_s8 = sld [smem:[#allocation13_spill]] (!%p629_p2)  ;;  %p2538_p4 = scmp.ne.s32.totalorder (!%p629_p2), %s3082_s30, 0 }
  0x17   : > { %s3088_s20 = scalar_select %p719_p3, %s3082_s30, 1 }
  0x18   : > { %s3550_s17 = sld [smem:[#allocation9_spill]] (!%p2538_p4) }
  0x19   : > { %s2619_s25 = sshll.u32 %s3088_s20, 6  ;;  %s2531_s3 = sshll.u32 %s3088_s20, 1 }
  0x1a   : > { %s3103_s28 = scalar_lea.vmem %s3543_s6, %s2619_s25  ;;  %s3108_s1 = scalar_lea.vmem %s3544_s7, %s2531_s3 }
  0x1b   : > { %s2620_s0 = sshll.u32 %s3088_s20, 5  ;;  %s747_s29 = scalar_lea.vmem %s3517_s11, %s3088_s20 }
  0x1c   : > { %s3118_s23 = scalar_lea.vmem %s3545_s8, %s2620_s0  ;;  %s3131_s7 = scalar_lea.vmem %s3518_s12, %s2620_s0 }
  0x1d   : > { %s755_s22 = scalar_lea.vmem %s3519_s13, %s3088_s20  ;;  %s3140_s8 = scalar_lea.vmem %s3520_s14, %s2619_s25 }
  0x1e   : > { %s763_s26 = scalar_lea.vmem %s3521_s15, %s3088_s20  ;;  %768 = sbr.rel (%p2538_p4) target bundleno = 595 (0x253), region = 100 }
  0x1f   : > { %s3546_s0 = sld [smem:[#allocation8_spill]] (!%p2538_p4) }
  0x20   : > { %s3551_s16 = sld [smem:[#allocation10_spill]] (!%p2538_p4) }
  0x23   : > { %v2961_v1 = vmov 0   ;;  %vm880_vm0 = vcmask 564224   ;;  %vm884_vm1 = vcmask 1041408   ;;  %vm885_vm2 = vcmask 1042432   ;;  %v2555_v43 = vld [vmem:[%s3550_s17] ss:$0 sm:$0xff] }
  0x24   : > { %891 = vmatprep.subr.bf16.mxu0 %v2961_v1  ;;  %v2962_v9 = vmov 65535   ;;  %vm934_vm3 = vcmask 523264   ;;  %vm938_vm4 = vcmask 517120  }
  0x25   : > { %s3547_s3 = smov %s3546_s0  ;;  %v2821_v0 = vld [vmem:[%s3546_s0 + $0x38] sm:$0xff]   ;;  %s3548_s0 = sld [smem:[#allocation7_spill]]  ;;  %v886_v10 = vsel %vm884_vm1, 4294967295, %v2962_v9 }
  0x26   : > { %892 = vmatpush1.bf16.msra.mxu0 %v2821_v0  ;;  %v2822_v2 = vld [vmem:[%s3547_s3 + $0x30] sm:$0xff]   ;;  %v2823_v3 = vld [vmem:[%s3547_s3 + $0x28] sm:$0xff]   ;;  %v2824_v4 = vld [vmem:[%s3547_s3 + $0x20] sm:$0xff]   ;;  %v887_v13 = vsel %vm885_vm2, %v886_v10, 0 }
  0x27   : > { %893 = vmatprep.subr.bf16.mxu0 %v2961_v1  ;;  %v2825_v5 = vld [vmem:[%s3547_s3 + $0x18] sm:$0xff]   ;;  %v2826_v7 = vld [vmem:[%s3547_s3 + $0x10] sm:$0xff]   ;;  %v2827_v8 = vld [vmem:[%s3547_s3 + $0x8] sm:$0xff]  }
  0x28   : > { %v2828_v11 = vld [vmem:[%s3547_s3] sm:$0xff]   ;;  %v2830_v15 = vld [vmem:[%s3547_s3 + $0x58] sm:$0xff]   ;;  %v2831_v16 = vld [vmem:[%s3547_s3 + $0x50] sm:$0xff]  }
  0x29   : > { %v2829_v12 = vld [vmem:[%s3547_s3 + $0x60] ss:$0 sps:$4 sm:$0x77]   ;;  %v2832_v17 = vld [vmem:[%s3547_s3 + $0x48] sm:$0xff]  }
  0x2a   : > { %894 = vmatpush1.bf16.msra.mxu0 %v2822_v2  ;;  %v889_v14 = vand.u32 %v2829_v12, %v887_v13  ;;  %v2833_v18 = vld [vmem:[%s3547_s3 + $0x40] sm:$0xff]  }
  0x2b   : > { %895 = vmatprep.subr.bf16.mxu0 %v2961_v1  ;;  %s3549_s21 = smov %s3548_s0  ;;  %v2836_v6 = vld [vmem:[%s3548_s0 + $0x4] ss:$8 sps:$4 sm:$0x1f]   ;;  %v2556_v45 = vld [vmem:[%s3551_s16] ss:$0 sm:$0xff] }
  0x2c   : > { %2554 = vmatprep.mubr.msk.bf16.mxu0 %vm880_vm0, %v2836_v6  ;;  %v2834_v19 = vld [vmem:[%s3549_s21] ss:$8 sps:$4 sm:$0x1f]  }
  0x2e   : > { %896 = vmatpush1.bf16.msra.mxu0 %v2823_v3 }
  0x2f   : > { %897 = vmatprep.subr.bf16.mxu0 %v2961_v1 }
  0x32   : > { %898 = vmatpush1.bf16.msra.mxu0 %v2824_v4 }
  0x33   : > { %899 = vmatprep.subr.bf16.mxu0 %v2961_v1 }
  0x36   : > { %900 = vmatpush1.bf16.msra.mxu0 %v2825_v5 }
  0x37   : > { %901 = vmatprep.subr.bf16.mxu0 %v2961_v1 }
  0x3a   : > { %902 = vmatpush1.bf16.msra.mxu0 %v2826_v7 }
  0x3b   : > { %903 = vmatprep.subr.bf16.mxu0 %v2961_v1 }
  0x3e   : > { %904 = vmatpush1.bf16.msra.mxu0 %v2827_v8 }
  0x3f   : > { %905 = vmatprep.subr.bf16.mxu0 %v2961_v1 }
  0x42   : > { %906 = vmatpush1.bf16.msra.mxu0 %v2828_v11 }
  0x43   : > { %913 = vmatprep.subr.bf16.mxu0 %v2961_v1 }
  0x46   : > { %914 = vmatpush2.bf16.msra.mxu0 %v889_v14 }
  0x47   : > { %915 = vmatprep.subr.bf16.mxu0 %v2961_v1 }
  0x4a   : > { %916 = vmatpush2.bf16.msra.mxu0 %v2830_v15 }
  0x4b   : > { %917 = vmatprep.subr.bf16.mxu0 %v2961_v1 }
  0x4e   : > { %918 = vmatpush2.bf16.msra.mxu0 %v2831_v16 }
  0x4f   : > { %919 = vmatprep.subr.bf16.mxu0 %v2961_v1 }
  0x52   : > { %920 = vmatpush2.bf16.msra.mxu0 %v2832_v17 }
  0x53   : > { %921 = vmatprep.subr.bf16.mxu0 %v2961_v1 }
  0x56   : > { %922 = vmatpush2.bf16.msra.mxu0 %v2833_v18 }
  0x59   : > { %924 = vmatmul.mubr.bf16.vlgmr.msra.gmra.mxu0 %v2834_v19 }
 0x119   : > { %v925_v20 = vpop.f32.mrf.mxu0 }
 0x11a   : > { %v935_v21 = vsel %vm934_vm3, %v925_v20, 0.0 }
 0x11b   : > { %936 = vadd.xlane.f32.xlu0 %v935_v21  ;;  %v927_v22 = vpop.f32.mrf.mxu0 }
 0x11d   : > { %v928_v23 = vpop.f32.mrf.mxu0 }
 0x11e   : > { %v939_v24 = vsel %vm938_vm4, %v928_v23, 0.0 }
 0x11f   : > { %940 = vadd.xlane.f32.xlu0 %v939_v24  ;;  %v930_v25 = vpop.f32.mrf.mxu0 }
 0x1a4   : > { %v937_v26 = vpop.xlane.xlu0 %936 }
 0x1a5   : > { %v943_v27 = vmul.f32 0.015625, %v937_v26 }
 0x1a7   : > { %v945_v28 = vsub.f32 %v925_v20, %v943_v27 }
 0x1a8   : > { %v941_v29 = vpop.xlane.xlu0 %940 }
 0x1a9   : > { %v944_v30 = vmul.f32 0.015625, %v941_v29  ;;  %v947_v31 = vmul.f32 %v945_v28, %v945_v28 }
 0x1ab   : > { %v946_v32 = vsub.f32 %v928_v23, %v944_v30  ;;  %v949_v33 = vsel %vm934_vm3, %v947_v31, 0.0 }
 0x1ac   : > { %950 = vadd.xlane.f32.xlu1 %v949_v33 }
 0x1ad   : > { %v948_v34 = vmul.f32 %v946_v32, %v946_v32 }
 0x1af   : > { %v952_v35 = vsel %vm938_vm4, %v948_v34, 0.0 }
 0x1b0   : > { %953 = vadd.xlane.f32.xlu1 %v952_v35 }
 0x235   : > { %v951_v36 = vpop.xlane.xlu1 %950 }
 0x236   : > { %v955_v37 = vmul.f32 0.015625, %v951_v36 }
 0x238   : > { %v957_v38 = vadd.f32 1e-05, %v955_v37 }
 0x239   : > { %v954_v39 = vpop.xlane.xlu1 %953 }
 0x23a   : > { %2837 = vrsqrt.f32 %v957_v38  ;;  %v956_v40 = vmul.f32 0.015625, %v954_v39 }
 0x23c   : > { %v958_v41 = vadd.f32 1e-05, %v956_v40 }
 0x23e   : > { %2839 = vrsqrt.f32 %v958_v41 }
 0x247   : > { %v2838_v42 = vpop.eup %2837 }
 0x248   : > { %v961_v44 = vmul.f32 %v2838_v42, %v945_v28 }
 0x24a   : > { %v969_v46 = vmul.f32 %v2555_v43, %v961_v44 }
 0x24b   : > { %v2840_v47 = vpop.eup %2839 }
 0x24c   : > { %v977_v48 = vadd.f32 %v2556_v45, %v969_v46  ;;  %v962_v49 = vmul.f32 %v2840_v47, %v946_v32 }
 0x24e   : > { %979 = vst.msk [vmem:[#allocation2] sm:$0xff] %vm934_vm3, %v977_v48  ;;  %v970_v50 = vmul.f32 %v2555_v43, %v962_v49 }
 0x250   : > { %v978_v51 = vadd.f32 %v2556_v45, %v970_v50 }
 0x252   : > { %980 = vst.msk [vmem:[#allocation2 + $0x8] sm:$0x3] %vm938_vm4, %v978_v51 }
 0x253 PF: > { %vm1016_vm5 = vcmask 523264   ;;  %vm3530_vm6 = vcmask 517120   ;;  %v2841_v2 = vld [vmem:[%s3103_s28 + $0x34] ss:$8 sps:$4 sm:$0xff]   ;;  %v2843_v3 = vld [vmem:[%s3103_s28 + $0x30] ss:$8 sps:$4 sm:$0xff]   ;;  %s3552_s24 = scalar_lea.vmem %s3510_s4, %s3088_s20  ;;  %s3553_s27 = scalar_lea.vmem %s3511_s5, %s3088_s20  ;;  %v983_v29 = vlaneseq }
 0x254   : > { %v2844_v4 = vld [vmem:[%s3103_s28 + $0x24] ss:$8 sps:$4 sm:$0xff]   ;;  %1133 = vmatprep.subr.bf16.mxu0 %v2841_v2  ;;  %v2846_v5 = vld [vmem:[%s3103_s28 + $0x20] ss:$8 sps:$4 sm:$0xff]   ;;  %v2963_v6 = vmov 0   ;;  %v2964_v28 = vmov 0.0  }
 0x255   : > { %v3204_v52 = vld [vmem:[#allocation2] sm:$0xff]  ;;  %1134 = vmatpush1.bf16.msra.mxu0 %v2843_v3  ;;  %1157 = vmatprep.mubr.bf16.mxu0 %v2963_v6  ;;  %v2847_v7 = vld [vmem:[%s3103_s28 + $0x14] ss:$8 sps:$4 sm:$0xff]   ;;  %v2849_v8 = vld [vmem:[%s3103_s28 + $0x10] ss:$8 sps:$4 sm:$0xff]   ;;  %v3237_v30 = vshrl.u32 %v983_v29, 7 }
 0x256   : > { %v1017_v54 = vsel %vm1016_vm5, %v3204_v52, 0.0  ;;  %1135 = vmatprep.subr.bf16.mxu0 %v2844_v4  ;;  %v2850_v9 = vld [vmem:[%s3103_s28 + $0x4] ss:$8 sps:$4 sm:$0xff]   ;;  %v2852_v10 = vld [vmem:[%s3103_s28] ss:$8 sps:$4 sm:$0xff]   ;;  %2675 = vmatprep.subr.bf16.mxu1 %v2964_v28  ;;  %vm2965_vm7 = vmmov 0   ;;  %s3558_s28 = scalar_lea.vmem %s3515_s9, %s3088_s20 }
 0x257   : > { %1018 = vadd.xlane.f32.xlu0 %v1017_v54  ;;  %v2557_v19 = vld [vmem:[%s3552_s24] ss:$0 sm:$0xff]  ;;  %v1074_v31 = vsub.s32 0, %v3237_v30  ;;  %v1078_v33 = vsub.s32 1, %v3237_v30  ;;  %2677 = vmatprep.mubr.msk.bf16.mxu1 %vm2965_vm7, %v2964_v28  ;;  %vm1253_vm8 = vcmask 1044480   ;;  %s2967_s0 = smov 64  }
 0x258   : > { %v2558_v23 = vld [vmem:[%s3553_s27] ss:$0 sm:$0xff]  ;;  %s2968_s17 = smov 112   ;;  %vm1173_vm9 = vcmask 130048   ;;  %v3268_v54 = vand.u32 127, %v983_v29  ;;  %vm1000_vm10 = vcmp.ge.s32.totalorder %v3237_v30, 5 }
 0x259   : > { %v3206_v53 = vld [vmem:[#allocation2 + $0x8] sm:$0x3]  ;;  %1136 = vmatpush1.bf16.msra.mxu0 %v2846_v5  ;;  %v1070_v32 = vld [vmem:[%s3108_s1] sm:$0x3]  ;;  %s2966_s1 = smov 48   ;;  %vm990_vm12 = vcmp.lt.s32.totalorder %v3237_v30, 5 }
 0x25a   : > { %v1021_v55 = vsel %vm3530_vm6, %v3206_v53, 0.0  ;;  %1137 = vmatprep.subr.bf16.mxu0 %v2847_v7  ;;  %v1075_v35 = vrot.slane %v1070_v32, %v1074_v31  ;;  %v1079_v37 = vrot.slane %v1070_v32, %v1078_v33  ;;  %vm1006_vm11 = vcmp.ge.s32.totalorder %v3268_v54, 5  ;;  %s2969_s25 = smov 96   ;;  %s2970_s19 = smov 32  }
 0x25b   : > { %1022 = vadd.xlane.f32.xlu0 %v1021_v55  ;;  %vm997_vm13 = vcmp.lt.s32.totalorder %v3268_v54, 5  ;;  %vm1007_vm14 = vmand %vm1000_vm10, %vm1006_vm11  ;;  %vm1009_vm15 = vcmp.lt.s32.totalorder %v3268_v54, 10  ;;  %v985_v55 = vadd.s32 8, %v3237_v30  ;;  %vm1223_vm4 = vcmask 80896   ;;  %s2971_s16 = smov 16   ;;  %s2972_s2 = smov 80  }
 0x25c   : > { %vm998_vm0 = vmand %vm990_vm12, %vm997_vm13  ;;  %vm1227_vm12 = vcmask 74752   ;;  %p2604_p5 = scmp.ne.s32.totalorder %s3082_s30, 1 }
 0x25d   : > { %1138 = vmatpush1.bf16.msra.mxu0 %v2849_v8  ;;  %vm1010_vm1 = vmand %vm1007_vm14, %vm1009_vm15  ;;  %vm1003_vm2 = vcmp.lt.s32.totalorder %v985_v55, 10  ;;  %s3566_s6 = sld [smem:[#allocation14_spill]] (!%p2604_p5) }
 0x25e   : > { %1139 = vmatprep.subr.bf16.mxu0 %v2850_v9  ;;  %vm3276_vm3 = vmor %vm998_vm0, %vm1010_vm1 }
 0x261   : > { %1140 = vmatpush1.bf16.msra.mxu0 %v2852_v10 }
 0x262   : > { %2669 = vmatprep.subr.bf16.mxu0 %v2964_v28 }
 0x2e0   : > { %v1019_v56 = vpop.xlane.xlu0 %1018 }
 0x2e1   : > { %v1025_v57 = vmul.f32 0.015625, %v1019_v56 }
 0x2e3   : > { %v1027_v58 = vsub.f32 %v3204_v52, %v1025_v57 }
 0x2e4   : > { %v1023_v59 = vpop.xlane.xlu0 %1022 }
 0x2e5   : > { %v1026_v60 = vmul.f32 0.015625, %v1023_v59  ;;  %v1029_v61 = vmul.f32 %v1027_v58, %v1027_v58 }
 0x2e7   : > { %v1028_v62 = vsub.f32 %v3206_v53, %v1026_v60  ;;  %v1031_v63 = vsel %vm1016_vm5, %v1029_v61, 0.0 }
 0x2e8   : > { %1032 = vadd.xlane.f32.xlu1 %v1031_v63 }
 0x2e9   : > { %v1030_v0 = vmul.f32 %v1028_v62, %v1028_v62 }
 0x2eb   : > { %v1034_v1 = vsel %vm3530_vm6, %v1030_v0, 0.0  ;;  %vm1008_vm6 = vmand %vm1003_vm2, %vm1006_vm11 }
 0x2ec   : > { %1035 = vadd.xlane.f32.xlu1 %v1034_v1  ;;  %vm3283_vm10 = vmand %vm1008_vm6, %vm1009_vm15  ;;  %vm3559_vm6 = vcmask 517120  }
 0x371   : > { %v1033_v11 = vpop.xlane.xlu1 %1032 }
 0x372   : > { %v1037_v12 = vmul.f32 0.015625, %v1033_v11 }
 0x374   : > { %v1039_v13 = vadd.f32 1e-05, %v1037_v12 }
 0x375   : > { %v1036_v14 = vpop.xlane.xlu1 %1035 }
 0x376   : > { %2869 = vrsqrt.f32 %v1039_v13  ;;  %v1038_v15 = vmul.f32 0.015625, %v1036_v14 }
 0x378   : > { %v1040_v16 = vadd.f32 1e-05, %v1038_v15 }
 0x37a   : > { %2871 = vrsqrt.f32 %v1040_v16 }
 0x383   : > { %v2870_v17 = vpop.eup %2869 }
 0x384   : > { %v1043_v18 = vmul.f32 %v2870_v17, %v1027_v58 }
 0x386   : > { %v1051_v22 = vmul.f32 %v2557_v19, %v1043_v18 }
 0x387   : > { %v2872_v20 = vpop.eup %2871 }
 0x388   : > { %v1044_v21 = vmul.f32 %v2872_v20, %v1028_v62  ;;  %v1059_v25 = vadd.f32 %v2558_v23, %v1051_v22 }
 0x38a   : > { %v1052_v24 = vmul.f32 %v2557_v19, %v1044_v21 }
 0x38c   : > { %v1060_v26 = vadd.f32 %v2558_v23, %v1052_v24 }
 0x38e   : > { %v1061_v27 = vpack.c.bf16 %v1060_v26, %v1059_v25 }
 0x390   : > { %2567 = vmatmul.mubr.msk.bf16.vlgmr.msra.gmra.mxu0 %vm1016_vm5, %v1061_v27 }
 0x391   : > { %2671 = vmatprep.mubr.msk.bf16.mxu0 %vm2965_vm7, %v2964_v28 }
 0x450   : > { %v1159_v34 = vpop.f32.mrf.mxu0 }
 0x451   : > { %v1160_v39 = vadd.f32 %v1159_v34, %v1075_v35 }
 0x452   : > { %v1161_v36 = vpop.f32.mrf.mxu0 }
 0x453   : > { %v1162_v42 = vadd.f32 %v1161_v36, %v1079_v37 }
 0x454   : > { %v1163_v38 = vpop.f32.mrf.mxu0 }
 0x455   : > { %v1164_v40 = vadd.f32 %v1163_v38, %v1075_v35 }
 0x456   : > { %v1165_v41 = vpop.f32.mrf.mxu0 }
 0x457   : > { %v3246_v43 = vpack.c.bf16 %v1164_v40, %v1160_v39  ;;  %v1166_v44 = vadd.f32 %v1165_v41, %v1079_v37 }
 0x459   : > { %v3248_v45 = vpack.c.bf16 %v1166_v44, %v1162_v42  ;;  %1303 = vrot.lane.b32.xlu1 %v3246_v43, %s2966_s1  ;;  %1171 = vrot.lane.b32.xlu0 %v3246_v43, %s2967_s0  ;;  %s3567_s1 = sld [smem:[#allocation15_spill]] (!%p2604_p5) }
 0x45b   : > { %v1255_v46 = vsel %vm1253_vm8, %v3248_v45, 0 }
 0x45c   : > { %2676 = vmatpush3.bf16.msra.mxu1 %v1255_v46 }
 0x45d   : > { %1301 = vrot.lane.b32.xlu1 %v3246_v43, %s2968_s17  ;;  %2687 = vmatprep.subr.bf16.mxu1 %v2964_v28 }
 0x4cb   : > { %v1172_v47 = vpop.permute.xlu0 %1171  ;;  %v1304_v49 = vpop.permute.xlu1 %1303 }
 0x4cc   : > { %v1178_v48 = vsel %vm1173_vm9, %v1172_v47, 0  ;;  %v1309_v50 = vsel %vm1173_vm9, %v1304_v49, 0 }
 0x4cd   : > { %2670 = vmatpush3.bf16.xpose.msra.mxu0 %v1178_v48 }
 0x4ce   : > { %2681 = vmatprep.subr.bf16.mxu0 %v2964_v28 }
 0x4cf   : > { %v1302_v51 = vpop.permute.xlu1 %1301 }
 0x4d4   : > { %2672 = vmatmul.mubr.msk.bf16.vlgmr.msra.gmra.mxu0 %vm1173_vm9, %v3246_v43 }
 0x4d5   : > { %2682 = vmatpush3.bf16.xpose.msra.mxu0 %v1309_v50  ;;  %2683 = vmatprep.mubr.msk.bf16.mxu0 %vm2965_vm7, %v2964_v28 }
 0x4d6   : > { %2693 = vmatprep.subr.bf16.mxu0 %v2964_v28 }
 0x4dc   : > { %2684 = vmatmul.mubr.msk.bf16.vlgmr.msra.gmra.mxu0 %vm1173_vm9, %v1302_v51 }
 0x4dd   : > { %2695 = vmatprep.mubr.msk.bf16.mxu0 %vm2965_vm7, %v2964_v28 }
 0x594   : > { %v1214_v57 = vpop.f32.mrf.mxu0 }
 0x595   : > { %v1221_v58 = vsel %vm3276_vm3, %v1214_v57, -1e+30 }
 0x596   : > { %v2673_v59 = vpop.f32.mrf.mxu0  ;;  %v1224_v60 = vsel %vm1223_vm4, %v1221_v58, -inf }
 0x597   : > { %1225 = vmax.xlane.f32.xlu1 %v1224_v60  ;;  %v2854_v59 = vld [vmem:[%s3118_s23 + $0x8] sm:$0xff]  }
 0x598   : > { %v1217_v62 = vpop.f32.mrf.mxu0  ;;  %2694 = vmatpush3.bf16.msra.mxu0 %v2854_v59  ;;  %v2855_v59 = vld [vmem:[%s3118_s23 + $0x10] sm:$0xff]  }
 0x599   : > { %v1222_v63 = vsel %vm3283_vm10, %v1217_v62, -1e+30  ;;  %2705 = vmatprep.subr.bf16.mxu0 %v2964_v28 }
 0x59a   : > { %v2674_v0 = vpop.f32.mrf.mxu0  ;;  %v1228_v1 = vsel %vm1227_vm12, %v1222_v63, -inf }
 0x59b   : > { %1229 = vmax.xlane.f32.xlu0 %v1228_v1 }
 0x59c   : > { %v1345_v2 = vpop.f32.mrf.mxu0 }
 0x59d   : > { %v1352_v3 = vsel %vm3276_vm3, %v1345_v2, -1e+30 }
 0x59e   : > { %v2685_v4 = vpop.f32.mrf.mxu0  ;;  %v1354_v5 = vsel %vm1223_vm4, %v1352_v3, -inf }
 0x59f   : > { %1355 = vmax.xlane.f32.xlu0 %v1354_v5 }
 0x5a0   : > { %v1348_v6 = vpop.f32.mrf.mxu0 }
 0x5a1   : > { %v1353_v7 = vsel %vm3283_vm10, %v1348_v6, -1e+30 }
 0x5a2   : > { %v2686_v8 = vpop.f32.mrf.mxu0  ;;  %v1357_v9 = vsel %vm1227_vm12, %v1353_v7, -inf }
 0x5a3   : > { %1358 = vmax.xlane.f32.xlu0 %v1357_v9 }
 0x620   : > { %v1226_v10 = vpop.xlane.xlu1 %1225 }
 0x621   : > { %v1231_v11 = vsub.f32 %v1221_v58, %v1226_v10  ;;  %v2853_v58 = vld [vmem:[%s3118_s23] sm:$0xff]  }
 0x623   : > { %v1233_v12 = vmul.f32 1.442695, %v1231_v11 }
 0x624   : > { %v1230_v13 = vpop.xlane.xlu0 %1229 }
 0x625   : > { %2873 = vpow2.f32 %v1233_v12  ;;  %v1232_v14 = vsub.f32 %v1222_v63, %v1230_v13 }
 0x627   : > { %v1235_v15 = vmul.f32 1.442695, %v1232_v14 }
 0x628   : > { %v1356_v16 = vpop.xlane.xlu0 %1355 }
 0x629   : > { %2875 = vpow2.f32 %v1235_v15  ;;  %v1360_v17 = vsub.f32 %v1352_v3, %v1356_v16 }
 0x62b   : > { %v1362_v18 = vmul.f32 1.442695, %v1360_v17 }
 0x62c   : > { %v1359_v19 = vpop.xlane.xlu0 %1358 }
 0x62d   : > { %2877 = vpow2.f32 %v1362_v18  ;;  %v1361_v20 = vsub.f32 %v1353_v7, %v1359_v19 }
 0x62f   : > { %v1364_v21 = vmul.f32 1.442695, %v1361_v20 }
 0x631   : > { %2879 = vpow2.f32 %v1364_v21 }
 0x632   : > { %v2874_v22 = vpop.eup %2873 }
 0x633   : > { %v1237_v23 = vsel %vm3276_vm3, %v2874_v22, 0.0 }
 0x634   : > { %v1239_v24 = vsel %vm1223_vm4, %v1237_v23, 0.0 }
 0x635   : > { %1240 = vadd.xlane.f32.xlu1 %v1239_v24 }
 0x636   : > { %v2876_v25 = vpop.eup %2875 }
 0x637   : > { %v1238_v26 = vsel %vm3283_vm10, %v2876_v25, 0.0 }
 0x638   : > { %v1242_v27 = vsel %vm1227_vm12, %v1238_v26, 0.0 }
 0x639   : > { %1243 = vadd.xlane.f32.xlu0 %v1242_v27 }
 0x63a   : > { %v2878_v29 = vpop.eup %2877 }
 0x63b   : > { %v1366_v31 = vsel %vm3276_vm3, %v2878_v29, 0.0 }
 0x63c   : > { %v1368_v32 = vsel %vm1223_vm4, %v1366_v31, 0.0 }
 0x63d   : > { %1369 = vadd.xlane.f32.xlu1 %v1368_v32 }
 0x63e   : > { %v2880_v33 = vpop.eup %2879 }
 0x63f   : > { %v1367_v34 = vsel %vm3283_vm10, %v2880_v33, 0.0 }
 0x640   : > { %v1371_v35 = vsel %vm1227_vm12, %v1367_v34, 0.0 }
 0x641   : > { %1372 = vadd.xlane.f32.xlu0 %v1371_v35 }
 0x64e   : > { %1380 = vrot.lane.b32.xlu1 %v3248_v45, %s2968_s17  ;;  %s3565_s17 = sld [smem:[#allocation16_spill]] (!%p2604_p5) }
 0x652   : > { %1532 = vrot.lane.b32.xlu1 %v3246_v43, %s2969_s25 }
 0x657   : > { %1534 = vrot.lane.b32.xlu0 %v3246_v43, %s2970_s19 }
 0x6be   : > { %v1241_v36 = vpop.xlane.xlu1 %1240 }
 0x6bf   : > { %2881 = vrcp.f32 %v1241_v36 }
 0x6c2   : > { %v1244_v37 = vpop.xlane.xlu0 %1243 }
 0x6c3   : > { %2883 = vrcp.f32 %v1244_v37 }
 0x6c6   : > { %v1370_v38 = vpop.xlane.xlu1 %1369 }
 0x6c7   : > { %2885 = vrcp.f32 %v1370_v38 }
 0x6ca   : > { %v1373_v39 = vpop.xlane.xlu0 %1372  ;;  %v1381_v46 = vpop.permute.xlu1 %1380 }
 0x6cb   : > { %2887 = vrcp.f32 %v1373_v39  ;;  %v1386_v48 = vsel %vm1253_vm8, %v1381_v46, 0 }
 0x6cc   : > { %v2882_v40 = vpop.eup %2881 }
 0x6cd   : > { %v1247_v42 = vmul.f32 %v2882_v40, %v1237_v23 }
 0x6ce   : > { %v1535_v4 = vpop.permute.xlu0 %1534  ;;  %v1533_v9 = vpop.permute.xlu1 %1532 }
 0x6cf   : > { %v1540_v8 = vsel %vm1173_vm9, %v1535_v4, 0 }
 0x6d0   : > { %v2884_v41 = vpop.eup %2883 }
 0x6d1   : > { %v1248_v44 = vmul.f32 %v2884_v41, %v1238_v26 }
 0x6d3   : > { %v1249_v47 = vpack.c.bf16 %v1248_v44, %v1247_v42 }
 0x6d4   : > { %v2886_v49 = vpop.eup %2885 }
 0x6d5   : > { %2678 = vmatmul.mubr.msk.bf16.vlgmr.msra.gmra.mxu1 %vm1223_vm4, %v1249_v47  ;;  %v1376_v51 = vmul.f32 %v2886_v49, %v1366_v31 }
 0x6d6   : > { %2688 = vmatpush3.bf16.msra.mxu1 %v1386_v48  ;;  %2689 = vmatprep.mubr.msk.bf16.mxu1 %vm2965_vm7, %v2964_v28 }
 0x6d7   : > { %2699 = vmatprep.subr.bf16.mxu1 %v2964_v28 }
 0x6d8   : > { %v2888_v50 = vpop.eup %2887 }
 0x6d9   : > { %v1377_v55 = vmul.f32 %v2888_v50, %v1367_v34 }
 0x6db   : > { %v1378_v57 = vpack.c.bf16 %v1377_v55, %v1376_v51 }
 0x6dd   : > { %2690 = vmatmul.mubr.msk.bf16.vlgmr.msra.gmra.mxu1 %vm1223_vm4, %v1378_v57 }
 0x6de   : > { %2701 = vmatprep.mubr.msk.bf16.mxu1 %vm2965_vm7, %v2964_v28  ;;  %2700 = vmatpush3.bf16.msra.mxu1 %v2853_v58 }
 0x6df   : > { %2711 = vmatprep.subr.bf16.mxu1 %v2964_v28 }
 0x795   : > { %v1291_v60 = vpop.f32.mrf.mxu1 }
 0x797   : > { %v2679_v62 = vpop.f32.mrf.mxu1 }
 0x799   : > { %v1294_v63 = vpop.f32.mrf.mxu1 }
 0x79a   : > { %v1298_v0 = vpack.c.bf16 %v1294_v63, %v1291_v60 }
 0x79b   : > { %v2680_v1 = vpop.f32.mrf.mxu1 }
 0x79c   : > { %2702 = vmatmul.mubr.msk.bf16.vlgmr.msra.gmra.mxu1 %vm1173_vm9, %v1298_v0 }
 0x79d   : > { %v1422_v2 = vpop.f32.mrf.mxu1  ;;  %2713 = vmatprep.mubr.msk.bf16.mxu1 %vm2965_vm7, %v2964_v28 }
 0x79f   : > { %v2691_v3 = vpop.f32.mrf.mxu1 }
 0x7a1   : > { %v1425_v5 = vpop.f32.mrf.mxu1 }
 0x7a2   : > { %v1429_v6 = vpack.c.bf16 %v1425_v5, %v1422_v2 }
 0x7a3   : > { %v2692_v7 = vpop.f32.mrf.mxu1 }
 0x7a4   : > { %2696 = vmatmul.mubr.msk.bf16.vlgmr.msra.gmra.mxu0 %vm1173_vm9, %v1429_v6 }
 0x7a5   : > { %2706 = vmatpush3.bf16.xpose.msra.mxu0 %v1540_v8  ;;  %2707 = vmatprep.mubr.msk.bf16.mxu0 %vm2965_vm7, %v2964_v28 }
 0x7a6   : > { %2717 = vmatprep.subr.bf16.mxu0 %v2964_v28 }
 0x7ac   : > { %2708 = vmatmul.mubr.msk.bf16.vlgmr.msra.gmra.mxu0 %vm1173_vm9, %v1533_v9 }
 0x7ad   : > { %2719 = vmatprep.mubr.msk.bf16.mxu0 %vm2965_vm7, %v2964_v28  ;;  %2718 = vmatpush3.bf16.msra.mxu0 %v2855_v59 }
 0x7ae   : > { %2729 = vmatprep.subr.bf16.mxu0 %v2964_v28 }
 0x85c   : > { %v1525_v10 = vpop.f32.mrf.mxu1 }
 0x85e   : > { %v2703_v11 = vpop.f32.mrf.mxu1 }
 0x860   : > { %v1528_v12 = vpop.f32.mrf.mxu1 }
 0x862   : > { %v2704_v13 = vpop.f32.mrf.mxu1 }
 0x864   : > { %v1475_v14 = vpop.f32.mrf.mxu0 }
 0x865   : > { %v3336_v15 = vadd.f32 %v1525_v10, %v1475_v14 }
 0x866   : > { %v2697_v16 = vpop.f32.mrf.mxu0 }
 0x868   : > { %v1478_v17 = vpop.f32.mrf.mxu0 }
 0x869   : > { %v3338_v18 = vadd.f32 %v1528_v12, %v1478_v17 }
 0x86a   : > { %v2698_v19 = vpop.f32.mrf.mxu0 }
 0x86c   : > { %v1576_v20 = vpop.f32.mrf.mxu0 }
 0x86d   : > { %v1583_v21 = vsel %vm3276_vm3, %v1576_v20, -1e+30 }
 0x86e   : > { %v2709_v22 = vpop.f32.mrf.mxu0  ;;  %v1585_v23 = vsel %vm1223_vm4, %v1583_v21, -inf }
 0x86f   : > { %1586 = vmax.xlane.f32.xlu1 %v1585_v23 }
 0x870   : > { %v1579_v24 = vpop.f32.mrf.mxu0 }
 0x871   : > { %v1584_v25 = vsel %vm3283_vm10, %v1579_v24, -1e+30 }
 0x872   : > { %v2710_v26 = vpop.f32.mrf.mxu0  ;;  %v1588_v27 = vsel %vm1227_vm12, %v1584_v25, -inf }
 0x873   : > { %1589 = vmax.xlane.f32.xlu0 %v1588_v27 }
 0x8f8   : > { %v1587_v29 = vpop.xlane.xlu1 %1586 }
 0x8f9   : > { %v1591_v31 = vsub.f32 %v1583_v21, %v1587_v29 }
 0x8fb   : > { %v1593_v32 = vmul.f32 1.442695, %v1591_v31 }
 0x8fc   : > { %v1590_v33 = vpop.xlane.xlu0 %1589 }
 0x8fd   : > { %2889 = vpow2.f32 %v1593_v32  ;;  %v1592_v34 = vsub.f32 %v1584_v25, %v1590_v33 }
 0x8ff   : > { %v1595_v35 = vmul.f32 1.442695, %v1592_v34 }
 0x901   : > { %2891 = vpow2.f32 %v1595_v35 }
 0x90a   : > { %v2890_v36 = vpop.eup %2889 }
 0x90b   : > { %v1597_v37 = vsel %vm3276_vm3, %v2890_v36, 0.0 }
 0x90c   : > { %v1599_v38 = vsel %vm1223_vm4, %v1597_v37, 0.0 }
 0x90d   : > { %1600 = vadd.xlane.f32.xlu0 %v1599_v38 }
 0x90e   : > { %v2892_v39 = vpop.eup %2891 }
 0x90f   : > { %v1598_v40 = vsel %vm3283_vm10, %v2892_v39, 0.0 }
 0x910   : > { %v1602_v41 = vsel %vm1227_vm12, %v1598_v40, 0.0 }
 0x911   : > { %1603 = vadd.xlane.f32.xlu1 %v1602_v41 }
 0x922   : > { %1716 = vrot.lane.b32.xlu1 %v3246_v43, %s2971_s16 }
 0x923   : > { %1610 = vrot.lane.b32.xlu0 %v3248_v45, %s2969_s25 }
 0x926   : > { %1714 = vrot.lane.b32.xlu1 %v3246_v43, %s2972_s2 }
 0x996   : > { %v1601_v42 = vpop.xlane.xlu0 %1600 }
 0x997   : > { %2893 = vrcp.f32 %v1601_v42 }
 0x99a   : > { %v1604_v44 = vpop.xlane.xlu1 %1603  ;;  %v1611_v46 = vpop.permute.xlu0 %1610 }
 0x99b   : > { %2895 = vrcp.f32 %v1604_v44  ;;  %v1616_v47 = vsel %vm1253_vm8, %v1611_v46, 0  ;;  %v2584_v46 = vld [vmem:[%s3558_s28] ss:$0 sm:$0xff] }
 0x99c   : > { %2712 = vmatpush3.bf16.msra.mxu1 %v1616_v47 }
 0x99d   : > { %2723 = vmatprep.subr.bf16.mxu1 %v2964_v28 }
 0x99e   : > { %v1717_v55 = vpop.permute.xlu1 %1716 }
 0x99f   : > { %v1722_v58 = vsel %vm1173_vm9, %v1717_v55, 0 }
 0x9a2   : > { %v1715_v43 = vpop.permute.xlu1 %1714 }
 0x9a4   : > { %v2894_v48 = vpop.eup %2893 }
 0x9a5   : > { %v1607_v50 = vmul.f32 %v2894_v48, %v1597_v37 }
 0x9a8   : > { %v2896_v49 = vpop.eup %2895 }
 0x9a9   : > { %v1608_v51 = vmul.f32 %v2896_v49, %v1598_v40 }
 0x9ab   : > { %v1609_v57 = vpack.c.bf16 %v1608_v51, %v1607_v50 }
 0x9ad   : > { %2714 = vmatmul.mubr.msk.bf16.vlgmr.msra.gmra.mxu1 %vm1223_vm4, %v1609_v57 }
 0x9ae   : > { %2724 = vmatpush3.bf16.xpose.msra.mxu1 %v1722_v58  ;;  %2725 = vmatprep.mubr.msk.bf16.mxu1 %vm2965_vm7, %v2964_v28 }
 0x9af   : > { %2735 = vmatprep.subr.bf16.mxu1 %v2964_v28 }
 0x9b5   : > { %2726 = vmatmul.mubr.msk.bf16.vlgmr.msra.gmra.mxu1 %vm1173_vm9, %v1715_v43 }
 0x9b6   : > { %2737 = vmatprep.mubr.msk.bf16.mxu1 %vm2965_vm7, %v2964_v28 }
 0xa6d   : > { %v1652_v60 = vpop.f32.mrf.mxu1 }
 0xa6f   : > { %v2715_v62 = vpop.f32.mrf.mxu1 }
 0xa71   : > { %v1655_v63 = vpop.f32.mrf.mxu1 }
 0xa72   : > { %v1659_v0 = vpack.c.bf16 %v1655_v63, %v1652_v60 }
 0xa73   : > { %v2716_v1 = vpop.f32.mrf.mxu1 }
 0xa74   : > { %2720 = vmatmul.mubr.msk.bf16.vlgmr.msra.gmra.mxu0 %vm1173_vm9, %v1659_v0 }
 0xa75   : > { %v1758_v2 = vpop.f32.mrf.mxu1  ;;  %2731 = vmatprep.mubr.msk.bf16.mxu0 %vm2965_vm7, %v2964_v28 }
 0xa76   : > { %v1765_v3 = vsel %vm3276_vm3, %v1758_v2, -1e+30 }
 0xa77   : > { %v2727_v4 = vpop.f32.mrf.mxu1  ;;  %v1767_v5 = vsel %vm1223_vm4, %v1765_v3, -inf }
 0xa78   : > { %1768 = vmax.xlane.f32.xlu1 %v1767_v5  ;;  %v2857_v5 = vld [vmem:[%s3131_s7 + $0x18] sm:$0xff]  }
 0xa79   : > { %v1761_v6 = vpop.f32.mrf.mxu1 }
 0xa7a   : > { %v1766_v7 = vsel %vm3283_vm10, %v1761_v6, -1e+30  ;;  %v2858_v6 = vld [vmem:[%s3131_s7 + $0x10] sm:$0xff]  }
 0xa7b   : > { %v2728_v8 = vpop.f32.mrf.mxu1  ;;  %v1770_v9 = vsel %vm1227_vm12, %v1766_v7, -inf }
 0xa7c   : > { %1771 = vmax.xlane.f32.xlu0 %v1770_v9  ;;  %v2860_v8 = vld [vmem:[%s3131_s7] sm:$0xff]  }
 0xa89   : > { %1792 = vrot.lane.b32.xlu1 %v3248_v45, %s2972_s2 }
 0xb01   : > { %v1769_v10 = vpop.xlane.xlu1 %1768 }
 0xb02   : > { %v1773_v11 = vsub.f32 %v1765_v3, %v1769_v10 }
 0xb04   : > { %v1775_v12 = vmul.f32 1.442695, %v1773_v11 }
 0xb05   : > { %v1793_v13 = vpop.permute.xlu1 %1792  ;;  %v1772_v14 = vpop.xlane.xlu0 %1771 }
 0xb06   : > { %2897 = vpow2.f32 %v1775_v12  ;;  %v1798_v16 = vsel %vm1253_vm8, %v1793_v13, 0  ;;  %v1774_v17 = vsub.f32 %v1766_v7, %v1772_v14  ;;  %v2859_v7 = vld [vmem:[%s3131_s7 + $0x8] sm:$0xff]   ;;  %s3561_s7 = scalar_lea.vmem %s3516_s10, %s3088_s20  ;;  %vm3562_vm8 = vmmov %vm3559_vm6 }
 0xb07   : > { %2730 = vmatpush3.bf16.msra.mxu0 %v1798_v16 }
 0xb08   : > { %v1777_v19 = vmul.f32 1.442695, %v1774_v17  ;;  %2741 = vmatprep.subr.bf16.mxu0 %v2964_v28 }
 0xb0a   : > { %2899 = vpow2.f32 %v1777_v19  ;;  %v2585_v19 = vld [vmem:[%s3561_s7] ss:$0 sm:$0xff] }
 0xb13   : > { %v2898_v20 = vpop.eup %2897 }
 0xb14   : > { %v1779_v21 = vsel %vm3276_vm3, %v2898_v20, 0.0 }
 0xb15   : > { %v1781_v45 = vsel %vm1223_vm4, %v1779_v21, 0.0 }
 0xb16   : > { %1782 = vadd.xlane.f32.xlu0 %v1781_v45 }
 0xb17   : > { %v2900_v22 = vpop.eup %2899 }
 0xb18   : > { %v1780_v23 = vsel %vm3283_vm10, %v2900_v22, 0.0  ;;  %v2586_v22 = vld [vmem:[%s747_s29] ss:$0 sm:$0xff] }
 0xb19   : > { %v1784_v24 = vsel %vm1227_vm12, %v1780_v23, 0.0 }
 0xb1a   : > { %1785 = vadd.xlane.f32.xlu0 %v1784_v24 }
 0xb34   : > { %v1705_v25 = vpop.f32.mrf.mxu0 }
 0xb35   : > { %v1712_v26 = vadd.f32 %v1705_v25, %v3336_v15  ;;  %v2856_v15 = vld [vmem:[%s3118_s23 + $0x18] sm:$0xff]  }
 0xb36   : > { %v2721_v27 = vpop.f32.mrf.mxu0  ;;  %2736 = vmatpush3.bf16.msra.mxu1 %v2856_v15 }
 0xb37   : > { %2753 = vmatprep.subr.bf16.mxu1 %v2964_v28  ;;  %v2861_v27 = vld [vmem:[%s3140_s8 + $0x38] sm:$0xff]  }
 0xb38   : > { %v1708_v29 = vpop.f32.mrf.mxu0 }
 0xb39   : > { %v1713_v31 = vadd.f32 %v1708_v29, %v3338_v18  ;;  %v2862_v29 = vld [vmem:[%s3140_s8 + $0x30] sm:$0xff]  }
 0xb3a   : > { %v2722_v56 = vpop.f32.mrf.mxu0 }
 0xb3b   : > { %v2864_v56 = vld [vmem:[%s3140_s8 + $0x20] sm:$0xff]  }
 0xb9f   : > { %v1783_v32 = vpop.xlane.xlu0 %1782 }
 0xba0   : > { %2901 = vrcp.f32 %v1783_v32  ;;  %v2865_v32 = vld [vmem:[%s3140_s8 + $0x18] sm:$0xff]  }
 0xba3   : > { %v1786_v33 = vpop.xlane.xlu0 %1785 }
 0xba4   : > { %2903 = vrcp.f32 %v1786_v33  ;;  %v2866_v33 = vld [vmem:[%s3140_s8 + $0x10] sm:$0xff]  }
 0xbad   : > { %v2902_v34 = vpop.eup %2901 }
 0xbae   : > { %v1789_v61 = vmul.f32 %v2902_v34, %v1779_v21  ;;  %v2867_v34 = vld [vmem:[%s3140_s8 + $0x8] sm:$0xff]  }
 0xbb1   : > { %v2904_v35 = vpop.eup %2903 }
 0xbb2   : > { %v1790_v36 = vmul.f32 %v2904_v35, %v1780_v23  ;;  %v2868_v35 = vld [vmem:[%s3140_s8] sm:$0xff]  }
 0xbb4   : > { %v1791_v37 = vpack.c.bf16 %v1790_v36, %v1789_v61  ;;  %v2587_v61 = vld [vmem:[%s755_s22] ss:$0 sm:$0xff] }
 0xbb6   : > { %2732 = vmatmul.mubr.msk.bf16.vlgmr.msra.gmra.mxu0 %vm1223_vm4, %v1791_v37 }
 0xbb7   : > { %2749 = vmatprep.mubr.msk.bf16.mxu0 %vm2965_vm7, %v2964_v28  ;;  %2742 = vmatpush3.bf16.msra.mxu0 %v2857_v5 }
 0xbb8   : > { %2743 = vmatprep.subr.bf16.mxu0 %v2964_v28 }
 0xbbb   : > { %2744 = vmatpush3.bf16.msra.mxu0 %v2858_v6 }
 0xbbc   : > { %2745 = vmatprep.subr.bf16.mxu0 %v2964_v28 }
 0xbbf   : > { %2746 = vmatpush3.bf16.msra.mxu0 %v2859_v7 }
 0xbc0   : > { %2747 = vmatprep.subr.bf16.mxu0 %v2964_v28 }
 0xbc3   : > { %2748 = vmatpush3.bf16.msra.mxu0 %v2860_v8 }
 0xc76   : > { %v1834_v18 = vpop.f32.mrf.mxu0 }
 0xc78   : > { %v2733_v38 = vpop.f32.mrf.mxu0 }
 0xc7a   : > { %v1837_v39 = vpop.f32.mrf.mxu0 }
 0xc7b   : > { %v1841_v40 = vpack.c.bf16 %v1837_v39, %v1834_v18 }
 0xc7c   : > { %v2734_v41 = vpop.f32.mrf.mxu0 }
 0xc7d   : > { %2738 = vmatmul.mubr.msk.bf16.vlgmr.msra.gmra.mxu1 %vm1173_vm9, %v1841_v40 }
 0xc7e   : > { %2769 = vmatprep.mubr.msk.bf16.mxu1 %vm2965_vm7, %v2964_v28  ;;  %vm3560_vm7 = vmmov %vm3559_vm6  ;;  %2754 = vmatpush3.bf16.msra.mxu1 %v2861_v27 }
 0xc7f   : > { %2755 = vmatprep.subr.bf16.mxu1 %v2964_v28 }
 0xc82   : > { %2756 = vmatpush3.bf16.msra.mxu1 %v2862_v29 }
 0xc83   : > { %2757 = vmatprep.subr.bf16.mxu1 %v2964_v28 }
 0xd3d   : > { %v1887_v42 = vpop.f32.mrf.mxu1 }
 0xd3e   : > { %v1894_v44 = vadd.f32 %v1887_v42, %v1712_v26 }
 0xd3f   : > { %v2739_v47 = vpop.f32.mrf.mxu1 }
 0xd40   : > { %v1896_v48 = vadd.f32 %v1894_v44, %v3204_v52 }
 0xd41   : > { %v1890_v49 = vpop.f32.mrf.mxu1 }
 0xd42   : > { %v3404_v50 = vadd.f32 %v2584_v46, %v1896_v48  ;;  %v1895_v51 = vadd.f32 %v1890_v49, %v1713_v31  ;;  %v2863_v31 = vld [vmem:[%s3140_s8 + $0x28] sm:$0xff]  }
 0xd43   : > { %v2740_v55 = vpop.f32.mrf.mxu1  ;;  %2758 = vmatpush3.bf16.msra.mxu1 %v2863_v31 }
 0xd44   : > { %v1897_v57 = vadd.f32 %v1895_v51, %v3206_v53  ;;  %v1909_v58 = vsel %vm1016_vm5, %v3404_v50, 0.0  ;;  %2759 = vmatprep.subr.bf16.mxu1 %v2964_v28 }
 0xd45   : > { %1910 = vadd.xlane.f32.xlu0 %v1909_v58 }
 0xd46   : > { %v3409_v43 = vadd.f32 %v2584_v46, %v1897_v57 }
 0xd47   : > { %2760 = vmatpush3.bf16.msra.mxu1 %v2864_v56 }
 0xd48   : > { %v1912_v59 = vsel %vm3559_vm6, %v3409_v43, 0.0  ;;  %2761 = vmatprep.subr.bf16.mxu1 %v2964_v28 }
 0xd49   : > { %1913 = vadd.xlane.f32.xlu0 %v1912_v59 }
 0xd4b   : > { %2762 = vmatpush3.bf16.msra.mxu1 %v2865_v32 }
 0xd4c   : > { %2763 = vmatprep.subr.bf16.mxu1 %v2964_v28 }
 0xd4f   : > { %2764 = vmatpush3.bf16.msra.mxu1 %v2866_v33 }
 0xd50   : > { %2765 = vmatprep.subr.bf16.mxu1 %v2964_v28 }
 0xd53   : > { %2766 = vmatpush3.bf16.msra.mxu1 %v2867_v34 }
 0xd54   : > { %2767 = vmatprep.subr.bf16.mxu1 %v2964_v28 }
 0xd57   : > { %2768 = vmatpush3.bf16.msra.mxu1 %v2868_v35 }
 0xdce   : > { %v1911_v52 = vpop.xlane.xlu0 %1910 }
 0xdcf   : > { %v1915_v60 = vmul.f32 0.015625, %v1911_v52  ;;  %v2603_v52 = vld [vmem:[%s763_s26] ss:$0 sm:$0xff] }
 0xdd1   : > { %v1917_v62 = vsub.f32 %v3404_v50, %v1915_v60 }
 0xdd2   : > { %v1914_v63 = vpop.xlane.xlu0 %1913 }
 0xdd3   : > { %v1916_v0 = vmul.f32 0.015625, %v1914_v63  ;;  %v1919_v53 = vmul.f32 %v1917_v62, %v1917_v62 }
 0xdd5   : > { %v1918_v1 = vsub.f32 %v3409_v43, %v1916_v0  ;;  %v1921_v2 = vsel %vm1016_vm5, %v1919_v53, 0.0 }
 0xdd6   : > { %1922 = vadd.xlane.f32.xlu0 %v1921_v2 }
 0xdd7   : > { %v1920_v3 = vmul.f32 %v1918_v1, %v1918_v1 }
 0xdd9   : > { %v1924_v4 = vsel %vm3560_vm7, %v1920_v3, 0.0 }
 0xdda   : > { %1925 = vadd.xlane.f32.xlu0 %v1924_v4 }
 0xe5f   : > { %v1923_v9 = vpop.xlane.xlu0 %1922 }
 0xe60   : > { %v1927_v10 = vmul.f32 0.015625, %v1923_v9 }
 0xe62   : > { %v1929_v11 = vadd.f32 1e-05, %v1927_v10 }
 0xe63   : > { %v1926_v12 = vpop.xlane.xlu0 %1925 }
 0xe64   : > { %2905 = vrsqrt.f32 %v1929_v11  ;;  %v1928_v13 = vmul.f32 0.015625, %v1926_v12 }
 0xe66   : > { %v1930_v14 = vadd.f32 1e-05, %v1928_v13 }
 0xe68   : > { %2907 = vrsqrt.f32 %v1930_v14 }
 0xe71   : > { %v2906_v16 = vpop.eup %2905 }
 0xe72   : > { %v1933_v17 = vmul.f32 %v2906_v16, %v1917_v62 }
 0xe74   : > { %v1941_v45 = vmul.f32 %v2585_v19, %v1933_v17 }
 0xe75   : > { %v2908_v20 = vpop.eup %2907 }
 0xe76   : > { %v1934_v21 = vmul.f32 %v2908_v20, %v1918_v1  ;;  %v1949_v24 = vadd.f32 %v2586_v22, %v1941_v45 }
 0xe78   : > { %v1942_v23 = vmul.f32 %v2585_v19, %v1934_v21 }
 0xe7a   : > { %v1950_v25 = vadd.f32 %v2586_v22, %v1942_v23 }
 0xe7c   : > { %v1951_v26 = vpack.c.bf16 %v1950_v25, %v1949_v24 }
 0xe7e   : > { %2750 = vmatmul.mubr.msk.bf16.vlgmr.msra.gmra.mxu0 %vm1016_vm5, %v1951_v26 }
 0xf3e   : > { %v2028_v36 = vpop.f32.mrf.mxu0 }
 0xf3f   : > { %v2029_v37 = vadd.f32 %v2587_v61, %v2028_v36 }
 0xf40   : > { %v2751_v15 = vpop.f32.mrf.mxu0 }
 0xf41   : > { %v2593_v18 = vmul.f32 -1.702, %v2029_v37 }
 0xf42   : > { %v2031_v38 = vpop.f32.mrf.mxu0 }
 0xf43   : > { %v2039_v39 = vmul.f32 1.442695, %v2593_v18  ;;  %v2032_v40 = vadd.f32 %v2587_v61, %v2031_v38 }
 0xf44   : > { %v2752_v41 = vpop.f32.mrf.mxu0 }
 0xf45   : > { %2909 = vpow2.f32 %v2039_v39  ;;  %v2594_v42 = vmul.f32 -1.702, %v2032_v40 }
 0xf47   : > { %v2041_v44 = vmul.f32 1.442695, %v2594_v42 }
 0xf49   : > { %2911 = vpow2.f32 %v2041_v44 }
 0xf52   : > { %v2910_v28 = vpop.eup %2909 }
 0xf53   : > { %v2043_v46 = vadd.f32 1.0, %v2910_v28 }
 0xf55   : > { %2913 = vrcp.f32 %v2043_v46 }
 0xf56   : > { %v2912_v47 = vpop.eup %2911 }
 0xf57   : > { %v2044_v48 = vadd.f32 1.0, %v2912_v47 }
 0xf59   : > { %2915 = vrcp.f32 %v2044_v48 }
 0xf62   : > { %v2914_v49 = vpop.eup %2913 }
 0xf63   : > { %v2049_v55 = vmul.f32 %v2914_v49, %v2029_v37 }
 0xf66   : > { %v2916_v51 = vpop.eup %2915 }
 0xf67   : > { %v2050_v57 = vmul.f32 %v2916_v51, %v2032_v40 }
 0xf69   : > { %v2051_v58 = vpack.c.bf16 %v2050_v57, %v2049_v55 }
 0xf6b   : > { %2770 = vmatmul.mubr.bf16.vlgmr.msra.gmra.mxu1 %v2051_v58 }
0x102b   : > { %v2150_v59 = vpop.f32.mrf.mxu1 }
0x102c   : > { %v2157_v60 = vadd.f32 %v2150_v59, %v3404_v50 }
0x102d   : > { %v2771_v62 = vpop.f32.mrf.mxu1 }
0x102e   : > { %v2166_v63 = vadd.f32 %v2603_v52, %v2157_v60 }
0x102f   : > { %v2153_v0 = vpop.f32.mrf.mxu1 }
0x1030   : > { %2168 = vst.msk [vmem:[#allocation2] sm:$0xff] %vm1016_vm5, %v2166_v63  ;;  %v2158_v53 = vadd.f32 %v2153_v0, %v3409_v43  ;;  %2173 = sbr.rel (%p2604_p5) target bundleno = 5010 (0x1392), region = 104 }
0x1031   : > { %v2772_v1 = vpop.f32.mrf.mxu1 }
0x1032   : > { %v2167_v2 = vadd.f32 %v2603_v52, %v2158_v53 }
0x1034   : > { %2169 = vst.msk [vmem:[#allocation2 + $0x8] sm:$0x3] %vm3562_vm8, %v2167_v2 }
0x1035   : > { %vm2181_vm9 = vcmask 1041408   ;;  %v2174_v3 = vmul.u32 5, %v3237_v30  ;;  %v2973_v4 = vmov 0.0   ;;  %vm2974_vm11 = vmmov 0   ;;  %v2918_v11 = vld [vmem:[%s3565_s17 + $0x10] sm:$0xff]   ;;  %v2919_v12 = vld [vmem:[%s3565_s17 + $0x8] sm:$0xff]  }
0x1036   : > { %2773 = vmatprep.subr.mxu0 %v2973_v4  ;;  %2777 = vmatprep.mubr.msk.f32.mxu0 %vm2974_vm11, %v2973_v4  ;;  %vm3563_vm14 = vcmask 517120   ;;  %v2920_v13 = vld [vmem:[%s3565_s17] sm:$0xff]  }
0x1037   : > { %2774 = vmatpush3.msk.msra.mxu0 %vm2181_vm9, %v2167_v2  ;;  %vm2175_vm13 = vcmp.eq.s32.totalorder %v3268_v54, %v2174_v3  ;;  %2780 = vmatprep.subr.bf16.mxu1 %v2973_v4  ;;  %vm3564_vm15 = vmmov %vm3563_vm14  ;;  %v2917_v54 = vld [vmem:[%s3565_s17 + $0x18] sm:$0xff]   ;;  %v2608_v20 = vld [vmem:[%s3566_s6] ss:$0 sm:$0xff] }
0x1038   : > { %2775 = vmatprep.subr.mxu0 %v2973_v4  ;;  %v2605_v50 = vsel %vm2175_vm13, 1.0, %v2973_v4  ;;  %2788 = vmatprep.mubr.msk.bf16.mxu1 %vm2974_vm11, %v2973_v4  ;;  %v2609_v45 = vld [vmem:[%s3567_s1] ss:$0 sm:$0xff] }
0x1039   : > { %2776 = vmatpush3.msra.mxu0 %v2166_v63  ;;  %2781 = vmatpush3.bf16.msra.mxu1 %v2917_v54 }
0x103a   : > { %2778 = vmatmul.mubr.msk.f32.vlgmr.msra.gmra.mxu0 %vm1223_vm4, %v2605_v50  ;;  %2782 = vmatprep.subr.bf16.mxu1 %v2973_v4 }
0x103d   : > { %2783 = vmatpush3.bf16.msra.mxu1 %v2918_v11 }
0x103e   : > { %2784 = vmatprep.subr.bf16.mxu1 %v2973_v4 }
0x1041   : > { %2785 = vmatpush3.bf16.msra.mxu1 %v2919_v12 }
0x1042   : > { %2786 = vmatprep.subr.bf16.mxu1 %v2973_v4 }
0x1045   : > { %2787 = vmatpush3.bf16.msra.mxu1 %v2920_v13 }
0x10fa   : > { %v2251_v43 = vpop.f32.mrf.mxu0 }
0x10fb   : > { %v2257_v5 = vsel %vm3563_vm14, %v2251_v43, 0.0 }
0x10fc   : > { %2258 = vadd.xlane.f32.xlu0 %v2257_v5  ;;  %v2779_v30 = vpop.f32.mrf.mxu0 }
0x1185   : > { %v2259_v6 = vpop.xlane.xlu0 %2258 }
0x1186   : > { %v2260_v7 = vmul.f32 0.015625, %v2259_v6 }
0x1188   : > { %v2261_v8 = vsub.f32 %v2251_v43, %v2260_v7 }
0x118a   : > { %v2262_v9 = vmul.f32 %v2261_v8, %v2261_v8 }
0x118c   : > { %v2263_v10 = vsel %vm3564_vm15, %v2262_v9, 0.0 }
0x118d   : > { %2264 = vadd.xlane.f32.xlu0 %v2263_v10 }
0x1216   : > { %v2265_v14 = vpop.xlane.xlu0 %2264 }
0x1217   : > { %v2266_v16 = vmul.f32 0.015625, %v2265_v14 }
0x1219   : > { %v2267_v17 = vadd.f32 1e-05, %v2266_v16 }
0x121b   : > { %2921 = vrsqrt.f32 %v2267_v17 }
0x1228   : > { %v2922_v19 = vpop.eup %2921 }
0x1229   : > { %v2269_v21 = vmul.f32 %v2922_v19, %v2261_v8 }
0x122b   : > { %v2276_v22 = vmul.f32 %v2608_v20, %v2269_v21 }
0x122d   : > { %v2283_v23 = vadd.f32 %v2609_v45, %v2276_v22 }
0x122f   : > { %v2284_v24 = vpack.c.bf16 %v2283_v23, %v2283_v23 }
0x1231   : > { %2789 = vmatmul.mubr.msk.bf16.vlgmr.msra.gmra.mxu1 %vm1016_vm5, %v2284_v24 }
0x12f1   : > { %v2354_v25 = vpop.f32.mrf.mxu1 }
0x12f2   : > { %v2360_v26 = vmul.f32 %v2354_v25, %v2354_v25 }
0x12f3   : > { %v2790_v27 = vpop.f32.mrf.mxu1 }
0x12f4   : > { %v2361_v29 = vsel %vm2181_vm9, %v2360_v26, 0.0 }
0x12f5   : > { %2362 = vadd.xlane.f32.xlu1 %v2361_v29  ;;  %v2357_v31 = vpop.f32.mrf.mxu1 }
0x12f7   : > { %v2791_v56 = vpop.f32.mrf.mxu1 }
0x137e   : > { %v2363_v32 = vpop.xlane.xlu1 %2362 }
0x137f   : > { %v2364_v33 = vadd.f32 1e-12, %v2363_v32 }
0x1381   : > { %2923 = vrsqrt.f32 %v2364_v33 }
0x138e   : > { %v2924_v34 = vpop.eup %2923 }
0x138f   : > { %v2366_v35 = vmul.f32 %v2924_v34, %v2354_v25 }
0x1391   : > { %2367 = vst [vmem:[#allocation3] sm:$0x3] %v2366_v35 }
0x1392 PF: > { %p2796_p6 = scmp.eq.s32.totalorder %s3082_s30, 1  ;;  %s2975_s29 = smov [#allocation3]  }
0x1393   : > { %s2375_s0 = sshll.u32 %s2975_s29, 4  ;;  %s2376_s0 = int_to_ptr.vmem [resolvable:$true] %s2375_s0 }
0x1394   : > { %s2925_s8 = scalar_lea.vmem %s2376_s0, 32  ;;  %p2932_p10 = scmp.lt.s32.totalorder %s2376_s0, %s2376_s0 }
0x1395   : > { %p2926_p7 = scmp.ne.s32.totalorder %s2376_s0, %s2925_s8  ;;  %p2933_p11 = scmp.lt.s32.totalorder %s2925_s8, %s2925_s8 }
0x1397   : > { %p2927_p8 = pnand %p2926_p7, %p2796_p6  ;;  %p2934_p12 = por %p2933_p11, %p2932_p10 }
0x1399   : > { %p2928_p9 = pneg %p2927_p8 }
0x139b   : > { %p2935_p13 = pnand %p2934_p12, %p2928_p9 }
0x139d   : > { %2938 = shalt.err (!%p2935_p13)
}
0x139e   : > { %s3568_s26 = sld [smem:[#allocation17_spill]] }
0x13a4   : > { %2793 = dma.vmem_to_hbm [thread:$0]  (%p2796_p6), %s2376_s0, 32, %s3568_s26, [#allocation4]  }
0x13a5   : > { %2954 = dma.done.wait (%p2796_p6), [#allocation4], 32  }
0x13a6   : > { %2956 = vsyncadd (%p2796_p6), [#allocation4], 4294967264 }
0x13a7 PF: > { %s3569_s25 = sld [smem:[#allocation6_spill]] }
0x13ad   : > { %s30_s0 = sadd.s32 1, %s3569_s25  }
0x13ae   : > { %p27_p0 = scmp.ge.s32.totalorder %s30_s0, 4  }
0x13b0   :  { %29 = sbr.rel (!%p27_p0) target bundleno = 13 (0xd), region = 164 }
0x13b5   :  { %2388 = vsyncpa [#allocation4], 1 }
0x13b6   :  { %2390 = vsyncpa [#allocation4 + $0x1], 1 }

</bundles_post_ra>
